<compile_context>
chip_gen: v7x
topology: tpu7x:2x2x1
jax: 0.10.0
libtpu: 0.0.40
codegen_flags: <defaults>
</compile_context>

<pallas_src>
import functools
import math

import jax
import jax.numpy as jnp
from jax import lax
from jax.experimental import pallas as pl
from jax.experimental.pallas import tpu as pltpu

F32 = jnp.float32
BF16 = jnp.bfloat16
HIDDEN = 32          # feature_channels in LSTMEncoderModel


# ----------------------------------------------------------------------------
# Fused kernel: input projection + LSTM recurrence + hoisted final Linear
# ----------------------------------------------------------------------------
def _lstm_encoder_kernel(xseq_ref, w_ih_ref, w_hh_ref, b_ref, b_out_ref,
                         w_out_hbm_ref, y_ref,
                         hseq_ref, w_out_vmem_ref, dma_sem,
                         *, seq_len, batch, hidden, out_ch):
    H = hidden

    # (0) Kick off the (L*H, out_ch) Linear-weight HBM->VMEM copy right away;
    #     it is only consumed AFTER the recurrence, so it rides behind the
    #     serial LSTM chain instead of sitting exposed in front of the kernel.
    w_out_copy = pltpu.make_async_copy(w_out_hbm_ref, w_out_vmem_ref, dma_sem)
    w_out_copy.start()

    # (1) Input projection for ALL timesteps in one MXU matmul (bf16 operands,
    #     f32 accumulation): (L*B, Cin) @ (Cin, 4H) + bias -> (L*B, 4H).
    xproj = jnp.dot(xseq_ref[...].astype(BF16), w_ih_ref[...].astype(BF16),
                    preferred_element_type=F32) + b_ref[...]
    w_hh = w_hh_ref[...].astype(BF16)                         # (H, 4H) bf16

    h = jnp.zeros((batch, H), F32)                            # h_0 = 0
    c = jnp.zeros((batch, H), F32)                            # c_0 = 0

    # (2) Serial recurrence (true data dependence through h, c), statically
    #     unrolled.  The per-step Linear contribution is hoisted: h_t is just
    #     written to the (B, L*H) scratch at lane offset t*H; those stores are
    #     off the dependence chain and get hidden by the scheduler.
    for t in range(seq_len):
        g = xproj[t * batch:(t + 1) * batch, :] + jnp.dot(
            h.astype(BF16), w_hh, preferred_element_type=F32)  # (B, 4H) f32
        # Whole-tile nonlinearities, then static lane slices per gate.
        sig = jax.nn.sigmoid(g)
        tnh = jnp.tanh(g)
        i_g = sig[:, 0 * H:1 * H]
        f_g = sig[:, 1 * H:2 * H]
        c_g = tnh[:, 2 * H:3 * H]
        o_g = sig[:, 3 * H:4 * H]
        c = f_g * c + i_g * c_g
        h = o_g * jnp.tanh(c)
        hseq_ref[:, t * H:(t + 1) * H] = h

    # (3) One hoisted Linear: (B, L*H) @ (L*H, out_ch) + bias.  Wait for the
    #     weight DMA only now (it has been in flight for the whole recurrence).
    w_out_copy.wait()
    y_ref[...] = jnp.dot(hseq_ref[...], w_out_vmem_ref[...],
                         preferred_element_type=F32) + b_out_ref[...]


# ----------------------------------------------------------------------------
# Wrapper (mirrors LSTMEncoderModel.forward)
# ----------------------------------------------------------------------------
def lstm_encoder_forward(params, x, *, seq_len_future=3):
    """x: (B, C, L) float32, PyTorch NCL layout. Returns (h, hand_last, head_last)."""
    B, C, L = x.shape
    H = HIDDEN
    out_ch = params["b_out"].shape[-1]

    # hand_last / head_last: last-timestep slice broadcast over the future
    # horizon (trivial 3-lane slice + broadcast -> plain XLA, not kernel-worthy).
    hand_last = jnp.broadcast_to(x[:, :6, -1:], (B, 6, seq_len_future))
    head_last = jnp.broadcast_to(x[:, 6:, -1:], (B, C - 6, seq_len_future))

    # LSTM consumes x.permute(0, 2, 1) = (B, L, C); present it time-major and
    # batch-flattened: row t*B + b holds sample b at timestep t.
    xseq = jnp.transpose(x, (2, 0, 1)).reshape(L * B, C).astype(F32)

    kernel = functools.partial(_lstm_encoder_kernel,
                               seq_len=L, batch=B, hidden=H, out_ch=out_ch)
    vmem = pl.BlockSpec(memory_space=pltpu.MemorySpace.VMEM)
    y = pl.pallas_call(
        kernel,
        out_shape=jax.ShapeDtypeStruct((B, out_ch), F32),
        in_specs=[vmem, vmem, vmem, vmem, vmem,
                  pl.BlockSpec(memory_space=pl.ANY)],   # w_out: stays in HBM,
        out_specs=vmem,                                  # manually DMA'd inside
        scratch_shapes=[
            pltpu.VMEM((B, L * H), F32),                 # h_t stash (B, L*H)
            pltpu.VMEM((L * H, out_ch), F32),            # w_out landing buffer
            pltpu.SemaphoreType.DMA(()),
        ],
    )(xseq, params["w_ih"], params["w_hh"], params["bias"],
      params["b_out"], params["w_out"])

    return y, hand_last, head_last


# ----------------------------------------------------------------------------
# Deterministic synthetic parameter init (PyTorch-like uniform bounds)
# ----------------------------------------------------------------------------
def init_lstm_encoder_params(key, in_channels, seq_len, out_channels,
                             hidden=HIDDEN):
    k1, k2, k3, k4, k5, k6 = jax.random.split(key, 6)

    def u(k, shape, bound):
        return jax.random.uniform(k, shape, F32, minval=-bound, maxval=bound)

    b_lstm = 1.0 / math.sqrt(hidden)
    w_ih = u(k1, (in_channels, 4 * hidden), b_lstm)          # = weight_ih_l0.T
    w_hh = u(k2, (hidden, 4 * hidden), b_lstm)               # = weight_hh_l0.T
    bias = u(k3, (1, 4 * hidden), b_lstm) + u(k4, (1, 4 * hidden), b_lstm)

    b_lin = 1.0 / math.sqrt(hidden * seq_len)
    # Flat (L*H, out_ch) = nn.Linear.weight.T with the (l, h) -> l*H+h flatten
    # order matching h.reshape(B, -1) of the (B, L, H) LSTM output.
    w_out = u(k5, (seq_len * hidden, out_channels), b_lin)
    b_out = u(k6, (1, out_channels), b_lin)

    return {"w_ih": w_ih, "w_hh": w_hh, "bias": bias,
            "w_out": w_out, "b_out": b_out}


# ----------------------------------------------------------------------------
# Pure-JAX f32 reference (for in-script correctness check)
# ----------------------------------------------------------------------------
def _reference_forward(params, x, *, seq_len_future=3):
    B, C, L = x.shape
    H = HIDDEN
    xs = jnp.transpose(x, (0, 2, 1)).astype(F32)             # (B, L, C)

    def step(carry, x_t):
        h, c = carry
        g = x_t @ params["w_ih"] + h @ params["w_hh"] + params["bias"]
        i = jax.nn.sigmoid(g[:, :H])
        f = jax.nn.sigmoid(g[:, H:2 * H])
        gg = jnp.tanh(g[:, 2 * H:3 * H])
        o = jax.nn.sigmoid(g[:, 3 * H:])
        c = f * c + i * gg
        h = o * jnp.tanh(c)
        return (h, c), h

    init = (jnp.zeros((B, H), F32), jnp.zeros((B, H), F32))
    _, hs = lax.scan(step, init, jnp.transpose(xs, (1, 0, 2)))   # (L, B, H)
    hflat = jnp.transpose(hs, (1, 0, 2)).reshape(B, L * H)       # (B, L*H)
    y = hflat @ params["w_out"] + params["b_out"]
    hand_last = jnp.broadcast_to(x[:, :6, -1:], (B, 6, seq_len_future))
    head_last = jnp.broadcast_to(x[:, 6:, -1:], (B, C - 6, seq_len_future))
    return y, hand_last, head_last


if __name__ == "__main__":
    key = jax.random.PRNGKey(0)
    kp, kx = jax.random.split(key)

    B, C_IN, SEQ_LEN, SEQ_FUT, OUT_CH = 2, 9, 16, 3, 128
    params = init_lstm_encoder_params(kp, in_channels=C_IN, seq_len=SEQ_LEN,
                                      out_channels=OUT_CH)
    x = jax.random.normal(kx, (B, C_IN, SEQ_LEN), F32)        # PyTorch NCL input

    y, hand_last, head_last = lstm_encoder_forward(params, x,
                                                   seq_len_future=SEQ_FUT)
    y = jax.block_until_ready(y)

    assert y.shape == (B, OUT_CH), y.shape
    assert hand_last.shape == (B, 6, SEQ_FUT), hand_last.shape
    assert head_last.shape == (B, C_IN - 6, SEQ_FUT), head_last.shape
    assert bool(jnp.all(jnp.isfinite(y)))

    y_ref, hand_ref, head_ref = _reference_forward(params, x,
                                                   seq_len_future=SEQ_FUT)
    # Matmul operands are bf16 (f32 accumulation) -> loosened tolerance vs the
    # pure-f32 reference, per review guidance.
    assert bool(jnp.allclose(y, y_ref, rtol=2e-2, atol=2e-2))
    assert bool(jnp.allclose(hand_last, hand_ref))
    assert bool(jnp.allclose(head_last, head_ref))

    print("KERNEL_OK")
</pallas_src>

<mosaic_0001>
module attributes {stable_mosaic.version = 11 : i64} {
  func.func @_lstm_encoder_kernel(%arg0: memref<32x9xf32, #tpu.memory_space<vmem>>, %arg1: memref<9x128xf32, #tpu.memory_space<vmem>>, %arg2: memref<32x128xf32, #tpu.memory_space<vmem>>, %arg3: memref<1x128xf32, #tpu.memory_space<vmem>>, %arg4: memref<1x128xf32, #tpu.memory_space<vmem>>, %arg5: memref<512x128xf32, #tpu.memory_space<any>>, %arg6: memref<2x128xf32, #tpu.memory_space<vmem>>, %arg7: memref<2x512xf32, #tpu.memory_space<vmem>>, %arg8: memref<512x128xf32, #tpu.memory_space<vmem>>, %arg9: memref<!tpu.dma_semaphore, #tpu.memory_space<semaphore_mem>>) attributes {dimension_semantics = [], scalar_prefetch = 0 : i64, scratch_operands = 3 : i64, tpu.core_type = #tpu.core_type<tc>} {
    tpu.enqueue_dma source(%arg5 : memref<512x128xf32, #tpu.memory_space<any>>) target(%arg8 : memref<512x128xf32, #tpu.memory_space<vmem>>) target_semaphore(%arg9 : memref<!tpu.dma_semaphore, #tpu.memory_space<semaphore_mem>>)
    %c0 = arith.constant 0 : index
    %c0_0 = arith.constant 0 : index
    %0 = vector.load %arg0[%c0, %c0_0] : memref<32x9xf32, #tpu.memory_space<vmem>>, vector<32x9xf32>
    %1 = arith.truncf %0 : vector<32x9xf32> to vector<32x9xbf16>
    %c0_1 = arith.constant 0 : index
    %c0_2 = arith.constant 0 : index
    %2 = vector.load %arg1[%c0_1, %c0_2] : memref<9x128xf32, #tpu.memory_space<vmem>>, vector<9x128xf32>
    %3 = arith.truncf %2 : vector<9x128xf32> to vector<9x128xbf16>
    %cst = arith.constant dense<0.000000e+00> : vector<32x128xf32>
    %4 = tpu.matmul %1, %3, %cst {dimension_numbers = #tpu.dot_dimension_numbers<[1], [0], [0], [1], [0, 0, 1, 1], [], []>} : vector<32x9xbf16>, vector<9x128xbf16>, vector<32x128xf32> -> vector<32x128xf32>
    %c0_3 = arith.constant 0 : index
    %c0_4 = arith.constant 0 : index
    %5 = vector.load %arg3[%c0_3, %c0_4] : memref<1x128xf32, #tpu.memory_space<vmem>>, vector<1x128xf32>
    %6 = vector.broadcast %5 : vector<1x128xf32> to vector<32x128xf32>
    %7 = arith.addf %4, %6 : vector<32x128xf32>
    %c0_5 = arith.constant 0 : index
    %c0_6 = arith.constant 0 : index
    %8 = vector.load %arg2[%c0_5, %c0_6] : memref<32x128xf32, #tpu.memory_space<vmem>>, vector<32x128xf32>
    %9 = arith.truncf %8 : vector<32x128xf32> to vector<32x128xbf16>
    %cst_7 = arith.constant 0.000000e+00 : f32
    %10 = vector.broadcast %cst_7 : f32 to vector<2x32xf32>
    %cst_8 = arith.constant 0.000000e+00 : f32
    %11 = vector.broadcast %cst_8 : f32 to vector<2x32xf32>
    %12 = vector.extract_strided_slice %7 {offsets = [0, 0], sizes = [2, 128], strides = [1, 1]} : vector<32x128xf32> to vector<2x128xf32>
    %13 = arith.truncf %10 : vector<2x32xf32> to vector<2x32xbf16>
    %cst_9 = arith.constant dense<0.000000e+00> : vector<2x128xf32>
    %14 = tpu.matmul %13, %9, %cst_9 {dimension_numbers = #tpu.dot_dimension_numbers<[1], [0], [0], [1], [0, 0, 1, 1], [], []>} : vector<2x32xbf16>, vector<32x128xbf16>, vector<2x128xf32> -> vector<2x128xf32>
    %15 = arith.addf %12, %14 : vector<2x128xf32>
    %16 = arith.negf %15 : vector<2x128xf32>
    %17 = math.exp %16 : vector<2x128xf32>
    %cst_10 = arith.constant 1.000000e+00 : f32
    %18 = vector.broadcast %cst_10 : f32 to vector<2x128xf32>
    %19 = arith.addf %18, %17 : vector<2x128xf32>
    %20 = arith.divf %18, %19 : vector<2x128xf32>
    %21 = math.tanh %15 : vector<2x128xf32>
    %22 = vector.extract_strided_slice %20 {offsets = [0, 0], sizes = [2, 32], strides = [1, 1]} : vector<2x128xf32> to vector<2x32xf32>
    %23 = vector.extract_strided_slice %20 {offsets = [0, 32], sizes = [2, 32], strides = [1, 1]} : vector<2x128xf32> to vector<2x32xf32>
    %24 = vector.extract_strided_slice %21 {offsets = [0, 64], sizes = [2, 32], strides = [1, 1]} : vector<2x128xf32> to vector<2x32xf32>
    %25 = vector.extract_strided_slice %20 {offsets = [0, 96], sizes = [2, 32], strides = [1, 1]} : vector<2x128xf32> to vector<2x32xf32>
    %26 = arith.mulf %23, %11 : vector<2x32xf32>
    %27 = arith.mulf %22, %24 : vector<2x32xf32>
    %28 = arith.addf %26, %27 : vector<2x32xf32>
    %29 = math.tanh %28 : vector<2x32xf32>
    %30 = arith.mulf %25, %29 : vector<2x32xf32>
    %c0_11 = arith.constant 0 : index
    %c0_12 = arith.constant 0 : index
    %31 = vector.load %arg7[%c0_11, %c0_12] : memref<2x512xf32, #tpu.memory_space<vmem>>, vector<2x32xf32>
    tpu.vector_store %arg7[%c0_11, %c0_12], %30 {strides = array<i32>} : memref<2x512xf32, #tpu.memory_space<vmem>>, vector<2x32xf32>,
    %32 = vector.extract_strided_slice %7 {offsets = [2, 0], sizes = [2, 128], strides = [1, 1]} : vector<32x128xf32> to vector<2x128xf32>
    %33 = arith.truncf %30 : vector<2x32xf32> to vector<2x32xbf16>
    %cst_13 = arith.constant dense<0.000000e+00> : vector<2x128xf32>
    %34 = tpu.matmul %33, %9, %cst_13 {dimension_numbers = #tpu.dot_dimension_numbers<[1], [0], [0], [1], [0, 0, 1, 1], [], []>} : vector<2x32xbf16>, vector<32x128xbf16>, vector<2x128xf32> -> vector<2x128xf32>
    %35 = arith.addf %32, %34 : vector<2x128xf32>
    %36 = arith.negf %35 : vector<2x128xf32>
    %37 = math.exp %36 : vector<2x128xf32>
    %cst_14 = arith.constant 1.000000e+00 : f32
    %38 = vector.broadcast %cst_14 : f32 to vector<2x128xf32>
    %39 = arith.addf %38, %37 : vector<2x128xf32>
    %40 = arith.divf %38, %39 : vector<2x128xf32>
    %41 = math.tanh %35 : vector<2x128xf32>
    %42 = vector.extract_strided_slice %40 {offsets = [0, 0], sizes = [2, 32], strides = [1, 1]} : vector<2x128xf32> to vector<2x32xf32>
    %43 = vector.extract_strided_slice %40 {offsets = [0, 32], sizes = [2, 32], strides = [1, 1]} : vector<2x128xf32> to vector<2x32xf32>
    %44 = vector.extract_strided_slice %41 {offsets = [0, 64], sizes = [2, 32], strides = [1, 1]} : vector<2x128xf32> to vector<2x32xf32>
    %45 = vector.extract_strided_slice %40 {offsets = [0, 96], sizes = [2, 32], strides = [1, 1]} : vector<2x128xf32> to vector<2x32xf32>
    %46 = arith.mulf %43, %28 : vector<2x32xf32>
    %47 = arith.mulf %42, %44 : vector<2x32xf32>
    %48 = arith.addf %46, %47 : vector<2x32xf32>
    %49 = math.tanh %48 : vector<2x32xf32>
    %50 = arith.mulf %45, %49 : vector<2x32xf32>
    %c0_15 = arith.constant 0 : index
    %c32 = arith.constant 32 : index
    %51 = vector.load %arg7[%c0_15, %c32] : memref<2x512xf32, #tpu.memory_space<vmem>>, vector<2x32xf32>
    tpu.vector_store %arg7[%c0_15, %c32], %50 {strides = array<i32>} : memref<2x512xf32, #tpu.memory_space<vmem>>, vector<2x32xf32>,
    %52 = vector.extract_strided_slice %7 {offsets = [4, 0], sizes = [2, 128], strides = [1, 1]} : vector<32x128xf32> to vector<2x128xf32>
    %53 = arith.truncf %50 : vector<2x32xf32> to vector<2x32xbf16>
    %cst_16 = arith.constant dense<0.000000e+00> : vector<2x128xf32>
    %54 = tpu.matmul %53, %9, %cst_16 {dimension_numbers = #tpu.dot_dimension_numbers<[1], [0], [0], [1], [0, 0, 1, 1], [], []>} : vector<2x32xbf16>, vector<32x128xbf16>, vector<2x128xf32> -> vector<2x128xf32>
    %55 = arith.addf %52, %54 : vector<2x128xf32>
    %56 = arith.negf %55 : vector<2x128xf32>
    %57 = math.exp %56 : vector<2x128xf32>
    %cst_17 = arith.constant 1.000000e+00 : f32
    %58 = vector.broadcast %cst_17 : f32 to vector<2x128xf32>
    %59 = arith.addf %58, %57 : vector<2x128xf32>
    %60 = arith.divf %58, %59 : vector<2x128xf32>
    %61 = math.tanh %55 : vector<2x128xf32>
    %62 = vector.extract_strided_slice %60 {offsets = [0, 0], sizes = [2, 32], strides = [1, 1]} : vector<2x128xf32> to vector<2x32xf32>
    %63 = vector.extract_strided_slice %60 {offsets = [0, 32], sizes = [2, 32], strides = [1, 1]} : vector<2x128xf32> to vector<2x32xf32>
    %64 = vector.extract_strided_slice %61 {offsets = [0, 64], sizes = [2, 32], strides = [1, 1]} : vector<2x128xf32> to vector<2x32xf32>
    %65 = vector.extract_strided_slice %60 {offsets = [0, 96], sizes = [2, 32], strides = [1, 1]} : vector<2x128xf32> to vector<2x32xf32>
    %66 = arith.mulf %63, %48 : vector<2x32xf32>
    %67 = arith.mulf %62, %64 : vector<2x32xf32>
    %68 = arith.addf %66, %67 : vector<2x32xf32>
    %69 = math.tanh %68 : vector<2x32xf32>
    %70 = arith.mulf %65, %69 : vector<2x32xf32>
    %c0_18 = arith.constant 0 : index
    %c64 = arith.constant 64 : index
    %71 = vector.load %arg7[%c0_18, %c64] : memref<2x512xf32, #tpu.memory_space<vmem>>, vector<2x32xf32>
    tpu.vector_store %arg7[%c0_18, %c64], %70 {strides = array<i32>} : memref<2x512xf32, #tpu.memory_space<vmem>>, vector<2x32xf32>,
    %72 = vector.extract_strided_slice %7 {offsets = [6, 0], sizes = [2, 128], strides = [1, 1]} : vector<32x128xf32> to vector<2x128xf32>
    %73 = arith.truncf %70 : vector<2x32xf32> to vector<2x32xbf16>
    %cst_19 = arith.constant dense<0.000000e+00> : vector<2x128xf32>
    %74 = tpu.matmul %73, %9, %cst_19 {dimension_numbers = #tpu.dot_dimension_numbers<[1], [0], [0], [1], [0, 0, 1, 1], [], []>} : vector<2x32xbf16>, vector<32x128xbf16>, vector<2x128xf32> -> vector<2x128xf32>
    %75 = arith.addf %72, %74 : vector<2x128xf32>
    %76 = arith.negf %75 : vector<2x128xf32>
    %77 = math.exp %76 : vector<2x128xf32>
    %cst_20 = arith.constant 1.000000e+00 : f32
    %78 = vector.broadcast %cst_20 : f32 to vector<2x128xf32>
    %79 = arith.addf %78, %77 : vector<2x128xf32>
    %80 = arith.divf %78, %79 : vector<2x128xf32>
    %81 = math.tanh %75 : vector<2x128xf32>
    %82 = vector.extract_strided_slice %80 {offsets = [0, 0], sizes = [2, 32], strides = [1, 1]} : vector<2x128xf32> to vector<2x32xf32>
    %83 = vector.extract_strided_slice %80 {offsets = [0, 32], sizes = [2, 32], strides = [1, 1]} : vector<2x128xf32> to vector<2x32xf32>
    %84 = vector.extract_strided_slice %81 {offsets = [0, 64], sizes = [2, 32], strides = [1, 1]} : vector<2x128xf32> to vector<2x32xf32>
    %85 = vector.extract_strided_slice %80 {offsets = [0, 96], sizes = [2, 32], strides = [1, 1]} : vector<2x128xf32> to vector<2x32xf32>
    %86 = arith.mulf %83, %68 : vector<2x32xf32>
    %87 = arith.mulf %82, %84 : vector<2x32xf32>
    %88 = arith.addf %86, %87 : vector<2x32xf32>
    %89 = math.tanh %88 : vector<2x32xf32>
    %90 = arith.mulf %85, %89 : vector<2x32xf32>
    %c0_21 = arith.constant 0 : index
    %c96 = arith.constant 96 : index
    %91 = vector.load %arg7[%c0_21, %c96] : memref<2x512xf32, #tpu.memory_space<vmem>>, vector<2x32xf32>
    tpu.vector_store %arg7[%c0_21, %c96], %90 {strides = array<i32>} : memref<2x512xf32, #tpu.memory_space<vmem>>, vector<2x32xf32>,
    %92 = vector.extract_strided_slice %7 {offsets = [8, 0], sizes = [2, 128], strides = [1, 1]} : vector<32x128xf32> to vector<2x128xf32>
    %93 = arith.truncf %90 : vector<2x32xf32> to vector<2x32xbf16>
    %cst_22 = arith.constant dense<0.000000e+00> : vector<2x128xf32>
    %94 = tpu.matmul %93, %9, %cst_22 {dimension_numbers = #tpu.dot_dimension_numbers<[1], [0], [0], [1], [0, 0, 1, 1], [], []>} : vector<2x32xbf16>, vector<32x128xbf16>, vector<2x128xf32> -> vector<2x128xf32>
    %95 = arith.addf %92, %94 : vector<2x128xf32>
    %96 = arith.negf %95 : vector<2x128xf32>
    %97 = math.exp %96 : vector<2x128xf32>
    %cst_23 = arith.constant 1.000000e+00 : f32
    %98 = vector.broadcast %cst_23 : f32 to vector<2x128xf32>
    %99 = arith.addf %98, %97 : vector<2x128xf32>
    %100 = arith.divf %98, %99 : vector<2x128xf32>
    %101 = math.tanh %95 : vector<2x128xf32>
    %102 = vector.extract_strided_slice %100 {offsets = [0, 0], sizes = [2, 32], strides = [1, 1]} : vector<2x128xf32> to vector<2x32xf32>
    %103 = vector.extract_strided_slice %100 {offsets = [0, 32], sizes = [2, 32], strides = [1, 1]} : vector<2x128xf32> to vector<2x32xf32>
    %104 = vector.extract_strided_slice %101 {offsets = [0, 64], sizes = [2, 32], strides = [1, 1]} : vector<2x128xf32> to vector<2x32xf32>
    %105 = vector.extract_strided_slice %100 {offsets = [0, 96], sizes = [2, 32], strides = [1, 1]} : vector<2x128xf32> to vector<2x32xf32>
    %106 = arith.mulf %103, %88 : vector<2x32xf32>
    %107 = arith.mulf %102, %104 : vector<2x32xf32>
    %108 = arith.addf %106, %107 : vector<2x32xf32>
    %109 = math.tanh %108 : vector<2x32xf32>
    %110 = arith.mulf %105, %109 : vector<2x32xf32>
    %c0_24 = arith.constant 0 : index
    %c128 = arith.constant 128 : index
    %111 = vector.load %arg7[%c0_24, %c128] : memref<2x512xf32, #tpu.memory_space<vmem>>, vector<2x32xf32>
    tpu.vector_store %arg7[%c0_24, %c128], %110 {strides = array<i32>} : memref<2x512xf32, #tpu.memory_space<vmem>>, vector<2x32xf32>,
    %112 = vector.extract_strided_slice %7 {offsets = [10, 0], sizes = [2, 128], strides = [1, 1]} : vector<32x128xf32> to vector<2x128xf32>
    %113 = arith.truncf %110 : vector<2x32xf32> to vector<2x32xbf16>
    %cst_25 = arith.constant dense<0.000000e+00> : vector<2x128xf32>
    %114 = tpu.matmul %113, %9, %cst_25 {dimension_numbers = #tpu.dot_dimension_numbers<[1], [0], [0], [1], [0, 0, 1, 1], [], []>} : vector<2x32xbf16>, vector<32x128xbf16>, vector<2x128xf32> -> vector<2x128xf32>
    %115 = arith.addf %112, %114 : vector<2x128xf32>
    %116 = arith.negf %115 : vector<2x128xf32>
    %117 = math.exp %116 : vector<2x128xf32>
    %cst_26 = arith.constant 1.000000e+00 : f32
    %118 = vector.broadcast %cst_26 : f32 to vector<2x128xf32>
    %119 = arith.addf %118, %117 : vector<2x128xf32>
    %120 = arith.divf %118, %119 : vector<2x128xf32>
    %121 = math.tanh %115 : vector<2x128xf32>
    %122 = vector.extract_strided_slice %120 {offsets = [0, 0], sizes = [2, 32], strides = [1, 1]} : vector<2x128xf32> to vector<2x32xf32>
    %123 = vector.extract_strided_slice %120 {offsets = [0, 32], sizes = [2, 32], strides = [1, 1]} : vector<2x128xf32> to vector<2x32xf32>
    %124 = vector.extract_strided_slice %121 {offsets = [0, 64], sizes = [2, 32], strides = [1, 1]} : vector<2x128xf32> to vector<2x32xf32>
    %125 = vector.extract_strided_slice %120 {offsets = [0, 96], sizes = [2, 32], strides = [1, 1]} : vector<2x128xf32> to vector<2x32xf32>
    %126 = arith.mulf %123, %108 : vector<2x32xf32>
    %127 = arith.mulf %122, %124 : vector<2x32xf32>
    %128 = arith.addf %126, %127 : vector<2x32xf32>
    %129 = math.tanh %128 : vector<2x32xf32>
    %130 = arith.mulf %125, %129 : vector<2x32xf32>
    %c0_27 = arith.constant 0 : index
    %c160 = arith.constant 160 : index
    %131 = vector.load %arg7[%c0_27, %c160] : memref<2x512xf32, #tpu.memory_space<vmem>>, vector<2x32xf32>
    tpu.vector_store %arg7[%c0_27, %c160], %130 {strides = array<i32>} : memref<2x512xf32, #tpu.memory_space<vmem>>, vector<2x32xf32>,
    %132 = vector.extract_strided_slice %7 {offsets = [12, 0], sizes = [2, 128], strides = [1, 1]} : vector<32x128xf32> to vector<2x128xf32>
    %133 = arith.truncf %130 : vector<2x32xf32> to vector<2x32xbf16>
    %cst_28 = arith.constant dense<0.000000e+00> : vector<2x128xf32>
    %134 = tpu.matmul %133, %9, %cst_28 {dimension_numbers = #tpu.dot_dimension_numbers<[1], [0], [0], [1], [0, 0, 1, 1], [], []>} : vector<2x32xbf16>, vector<32x128xbf16>, vector<2x128xf32> -> vector<2x128xf32>
    %135 = arith.addf %132, %134 : vector<2x128xf32>
    %136 = arith.negf %135 : vector<2x128xf32>
    %137 = math.exp %136 : vector<2x128xf32>
    %cst_29 = arith.constant 1.000000e+00 : f32
    %138 = vector.broadcast %cst_29 : f32 to vector<2x128xf32>
    %139 = arith.addf %138, %137 : vector<2x128xf32>
    %140 = arith.divf %138, %139 : vector<2x128xf32>
    %141 = math.tanh %135 : vector<2x128xf32>
    %142 = vector.extract_strided_slice %140 {offsets = [0, 0], sizes = [2, 32], strides = [1, 1]} : vector<2x128xf32> to vector<2x32xf32>
    %143 = vector.extract_strided_slice %140 {offsets = [0, 32], sizes = [2, 32], strides = [1, 1]} : vector<2x128xf32> to vector<2x32xf32>
    %144 = vector.extract_strided_slice %141 {offsets = [0, 64], sizes = [2, 32], strides = [1, 1]} : vector<2x128xf32> to vector<2x32xf32>
    %145 = vector.extract_strided_slice %140 {offsets = [0, 96], sizes = [2, 32], strides = [1, 1]} : vector<2x128xf32> to vector<2x32xf32>
    %146 = arith.mulf %143, %128 : vector<2x32xf32>
    %147 = arith.mulf %142, %144 : vector<2x32xf32>
    %148 = arith.addf %146, %147 : vector<2x32xf32>
    %149 = math.tanh %148 : vector<2x32xf32>
    %150 = arith.mulf %145, %149 : vector<2x32xf32>
    %c0_30 = arith.constant 0 : index
    %c192 = arith.constant 192 : index
    %151 = vector.load %arg7[%c0_30, %c192] : memref<2x512xf32, #tpu.memory_space<vmem>>, vector<2x32xf32>
    tpu.vector_store %arg7[%c0_30, %c192], %150 {strides = array<i32>} : memref<2x512xf32, #tpu.memory_space<vmem>>, vector<2x32xf32>,
    %152 = vector.extract_strided_slice %7 {offsets = [14, 0], sizes = [2, 128], strides = [1, 1]} : vector<32x128xf32> to vector<2x128xf32>
    %153 = arith.truncf %150 : vector<2x32xf32> to vector<2x32xbf16>
    %cst_31 = arith.constant dense<0.000000e+00> : vector<2x128xf32>
    %154 = tpu.matmul %153, %9, %cst_31 {dimension_numbers = #tpu.dot_dimension_numbers<[1], [0], [0], [1], [0, 0, 1, 1], [], []>} : vector<2x32xbf16>, vector<32x128xbf16>, vector<2x128xf32> -> vector<2x128xf32>
    %155 = arith.addf %152, %154 : vector<2x128xf32>
    %156 = arith.negf %155 : vector<2x128xf32>
    %157 = math.exp %156 : vector<2x128xf32>
    %cst_32 = arith.constant 1.000000e+00 : f32
    %158 = vector.broadcast %cst_32 : f32 to vector<2x128xf32>
    %159 = arith.addf %158, %157 : vector<2x128xf32>
    %160 = arith.divf %158, %159 : vector<2x128xf32>
    %161 = math.tanh %155 : vector<2x128xf32>
    %162 = vector.extract_strided_slice %160 {offsets = [0, 0], sizes = [2, 32], strides = [1, 1]} : vector<2x128xf32> to vector<2x32xf32>
    %163 = vector.extract_strided_slice %160 {offsets = [0, 32], sizes = [2, 32], strides = [1, 1]} : vector<2x128xf32> to vector<2x32xf32>
    %164 = vector.extract_strided_slice %161 {offsets = [0, 64], sizes = [2, 32], strides = [1, 1]} : vector<2x128xf32> to vector<2x32xf32>
    %165 = vector.extract_strided_slice %160 {offsets = [0, 96], sizes = [2, 32], strides = [1, 1]} : vector<2x128xf32> to vector<2x32xf32>
    %166 = arith.mulf %163, %148 : vector<2x32xf32>
    %167 = arith.mulf %162, %164 : vector<2x32xf32>
    %168 = arith.addf %166, %167 : vector<2x32xf32>
    %169 = math.tanh %168 : vector<2x32xf32>
    %170 = arith.mulf %165, %169 : vector<2x32xf32>
    %c0_33 = arith.constant 0 : index
    %c224 = arith.constant 224 : index
    %171 = vector.load %arg7[%c0_33, %c224] : memref<2x512xf32, #tpu.memory_space<vmem>>, vector<2x32xf32>
    tpu.vector_store %arg7[%c0_33, %c224], %170 {strides = array<i32>} : memref<2x512xf32, #tpu.memory_space<vmem>>, vector<2x32xf32>,
    %172 = vector.extract_strided_slice %7 {offsets = [16, 0], sizes = [2, 128], strides = [1, 1]} : vector<32x128xf32> to vector<2x128xf32>
    %173 = arith.truncf %170 : vector<2x32xf32> to vector<2x32xbf16>
    %cst_34 = arith.constant dense<0.000000e+00> : vector<2x128xf32>
    %174 = tpu.matmul %173, %9, %cst_34 {dimension_numbers = #tpu.dot_dimension_numbers<[1], [0], [0], [1], [0, 0, 1, 1], [], []>} : vector<2x32xbf16>, vector<32x128xbf16>, vector<2x128xf32> -> vector<2x128xf32>
    %175 = arith.addf %172, %174 : vector<2x128xf32>
    %176 = arith.negf %175 : vector<2x128xf32>
    %177 = math.exp %176 : vector<2x128xf32>
    %cst_35 = arith.constant 1.000000e+00 : f32
    %178 = vector.broadcast %cst_35 : f32 to vector<2x128xf32>
    %179 = arith.addf %178, %177 : vector<2x128xf32>
    %180 = arith.divf %178, %179 : vector<2x128xf32>
    %181 = math.tanh %175 : vector<2x128xf32>
    %182 = vector.extract_strided_slice %180 {offsets = [0, 0], sizes = [2, 32], strides = [1, 1]} : vector<2x128xf32> to vector<2x32xf32>
    %183 = vector.extract_strided_slice %180 {offsets = [0, 32], sizes = [2, 32], strides = [1, 1]} : vector<2x128xf32> to vector<2x32xf32>
    %184 = vector.extract_strided_slice %181 {offsets = [0, 64], sizes = [2, 32], strides = [1, 1]} : vector<2x128xf32> to vector<2x32xf32>
    %185 = vector.extract_strided_slice %180 {offsets = [0, 96], sizes = [2, 32], strides = [1, 1]} : vector<2x128xf32> to vector<2x32xf32>
    %186 = arith.mulf %183, %168 : vector<2x32xf32>
    %187 = arith.mulf %182, %184 : vector<2x32xf32>
    %188 = arith.addf %186, %187 : vector<2x32xf32>
    %189 = math.tanh %188 : vector<2x32xf32>
    %190 = arith.mulf %185, %189 : vector<2x32xf32>
    %c0_36 = arith.constant 0 : index
    %c256 = arith.constant 256 : index
    %191 = vector.load %arg7[%c0_36, %c256] : memref<2x512xf32, #tpu.memory_space<vmem>>, vector<2x32xf32>
    tpu.vector_store %arg7[%c0_36, %c256], %190 {strides = array<i32>} : memref<2x512xf32, #tpu.memory_space<vmem>>, vector<2x32xf32>,
    %192 = vector.extract_strided_slice %7 {offsets = [18, 0], sizes = [2, 128], strides = [1, 1]} : vector<32x128xf32> to vector<2x128xf32>
    %193 = arith.truncf %190 : vector<2x32xf32> to vector<2x32xbf16>
    %cst_37 = arith.constant dense<0.000000e+00> : vector<2x128xf32>
    %194 = tpu.matmul %193, %9, %cst_37 {dimension_numbers = #tpu.dot_dimension_numbers<[1], [0], [0], [1], [0, 0, 1, 1], [], []>} : vector<2x32xbf16>, vector<32x128xbf16>, vector<2x128xf32> -> vector<2x128xf32>
    %195 = arith.addf %192, %194 : vector<2x128xf32>
    %196 = arith.negf %195 : vector<2x128xf32>
    %197 = math.exp %196 : vector<2x128xf32>
    %cst_38 = arith.constant 1.000000e+00 : f32
    %198 = vector.broadcast %cst_38 : f32 to vector<2x128xf32>
    %199 = arith.addf %198, %197 : vector<2x128xf32>
    %200 = arith.divf %198, %199 : vector<2x128xf32>
    %201 = math.tanh %195 : vector<2x128xf32>
    %202 = vector.extract_strided_slice %200 {offsets = [0, 0], sizes = [2, 32], strides = [1, 1]} : vector<2x128xf32> to vector<2x32xf32>
    %203 = vector.extract_strided_slice %200 {offsets = [0, 32], sizes = [2, 32], strides = [1, 1]} : vector<2x128xf32> to vector<2x32xf32>
    %204 = vector.extract_strided_slice %201 {offsets = [0, 64], sizes = [2, 32], strides = [1, 1]} : vector<2x128xf32> to vector<2x32xf32>
    %205 = vector.extract_strided_slice %200 {offsets = [0, 96], sizes = [2, 32], strides = [1, 1]} : vector<2x128xf32> to vector<2x32xf32>
    %206 = arith.mulf %203, %188 : vector<2x32xf32>
    %207 = arith.mulf %202, %204 : vector<2x32xf32>
    %208 = arith.addf %206, %207 : vector<2x32xf32>
    %209 = math.tanh %208 : vector<2x32xf32>
    %210 = arith.mulf %205, %209 : vector<2x32xf32>
    %c0_39 = arith.constant 0 : index
    %c288 = arith.constant 288 : index
    %211 = vector.load %arg7[%c0_39, %c288] : memref<2x512xf32, #tpu.memory_space<vmem>>, vector<2x32xf32>
    tpu.vector_store %arg7[%c0_39, %c288], %210 {strides = array<i32>} : memref<2x512xf32, #tpu.memory_space<vmem>>, vector<2x32xf32>,
    %212 = vector.extract_strided_slice %7 {offsets = [20, 0], sizes = [2, 128], strides = [1, 1]} : vector<32x128xf32> to vector<2x128xf32>
    %213 = arith.truncf %210 : vector<2x32xf32> to vector<2x32xbf16>
    %cst_40 = arith.constant dense<0.000000e+00> : vector<2x128xf32>
    %214 = tpu.matmul %213, %9, %cst_40 {dimension_numbers = #tpu.dot_dimension_numbers<[1], [0], [0], [1], [0, 0, 1, 1], [], []>} : vector<2x32xbf16>, vector<32x128xbf16>, vector<2x128xf32> -> vector<2x128xf32>
    %215 = arith.addf %212, %214 : vector<2x128xf32>
    %216 = arith.negf %215 : vector<2x128xf32>
    %217 = math.exp %216 : vector<2x128xf32>
    %cst_41 = arith.constant 1.000000e+00 : f32
    %218 = vector.broadcast %cst_41 : f32 to vector<2x128xf32>
    %219 = arith.addf %218, %217 : vector<2x128xf32>
    %220 = arith.divf %218, %219 : vector<2x128xf32>
    %221 = math.tanh %215 : vector<2x128xf32>
    %222 = vector.extract_strided_slice %220 {offsets = [0, 0], sizes = [2, 32], strides = [1, 1]} : vector<2x128xf32> to vector<2x32xf32>
    %223 = vector.extract_strided_slice %220 {offsets = [0, 32], sizes = [2, 32], strides = [1, 1]} : vector<2x128xf32> to vector<2x32xf32>
    %224 = vector.extract_strided_slice %221 {offsets = [0, 64], sizes = [2, 32], strides = [1, 1]} : vector<2x128xf32> to vector<2x32xf32>
    %225 = vector.extract_strided_slice %220 {offsets = [0, 96], sizes = [2, 32], strides = [1, 1]} : vector<2x128xf32> to vector<2x32xf32>
    %226 = arith.mulf %223, %208 : vector<2x32xf32>
    %227 = arith.mulf %222, %224 : vector<2x32xf32>
    %228 = arith.addf %226, %227 : vector<2x32xf32>
    %229 = math.tanh %228 : vector<2x32xf32>
    %230 = arith.mulf %225, %229 : vector<2x32xf32>
    %c0_42 = arith.constant 0 : index
    %c320 = arith.constant 320 : index
    %231 = vector.load %arg7[%c0_42, %c320] : memref<2x512xf32, #tpu.memory_space<vmem>>, vector<2x32xf32>
    tpu.vector_store %arg7[%c0_42, %c320], %230 {strides = array<i32>} : memref<2x512xf32, #tpu.memory_space<vmem>>, vector<2x32xf32>,
    %232 = vector.extract_strided_slice %7 {offsets = [22, 0], sizes = [2, 128], strides = [1, 1]} : vector<32x128xf32> to vector<2x128xf32>
    %233 = arith.truncf %230 : vector<2x32xf32> to vector<2x32xbf16>
    %cst_43 = arith.constant dense<0.000000e+00> : vector<2x128xf32>
    %234 = tpu.matmul %233, %9, %cst_43 {dimension_numbers = #tpu.dot_dimension_numbers<[1], [0], [0], [1], [0, 0, 1, 1], [], []>} : vector<2x32xbf16>, vector<32x128xbf16>, vector<2x128xf32> -> vector<2x128xf32>
    %235 = arith.addf %232, %234 : vector<2x128xf32>
    %236 = arith.negf %235 : vector<2x128xf32>
    %237 = math.exp %236 : vector<2x128xf32>
    %cst_44 = arith.constant 1.000000e+00 : f32
    %238 = vector.broadcast %cst_44 : f32 to vector<2x128xf32>
    %239 = arith.addf %238, %237 : vector<2x128xf32>
    %240 = arith.divf %238, %239 : vector<2x128xf32>
    %241 = math.tanh %235 : vector<2x128xf32>
    %242 = vector.extract_strided_slice %240 {offsets = [0, 0], sizes = [2, 32], strides = [1, 1]} : vector<2x128xf32> to vector<2x32xf32>
    %243 = vector.extract_strided_slice %240 {offsets = [0, 32], sizes = [2, 32], strides = [1, 1]} : vector<2x128xf32> to vector<2x32xf32>
    %244 = vector.extract_strided_slice %241 {offsets = [0, 64], sizes = [2, 32], strides = [1, 1]} : vector<2x128xf32> to vector<2x32xf32>
    %245 = vector.extract_strided_slice %240 {offsets = [0, 96], sizes = [2, 32], strides = [1, 1]} : vector<2x128xf32> to vector<2x32xf32>
    %246 = arith.mulf %243, %228 : vector<2x32xf32>
    %247 = arith.mulf %242, %244 : vector<2x32xf32>
    %248 = arith.addf %246, %247 : vector<2x32xf32>
    %249 = math.tanh %248 : vector<2x32xf32>
    %250 = arith.mulf %245, %249 : vector<2x32xf32>
    %c0_45 = arith.constant 0 : index
    %c352 = arith.constant 352 : index
    %251 = vector.load %arg7[%c0_45, %c352] : memref<2x512xf32, #tpu.memory_space<vmem>>, vector<2x32xf32>
    tpu.vector_store %arg7[%c0_45, %c352], %250 {strides = array<i32>} : memref<2x512xf32, #tpu.memory_space<vmem>>, vector<2x32xf32>,
    %252 = vector.extract_strided_slice %7 {offsets = [24, 0], sizes = [2, 128], strides = [1, 1]} : vector<32x128xf32> to vector<2x128xf32>
    %253 = arith.truncf %250 : vector<2x32xf32> to vector<2x32xbf16>
    %cst_46 = arith.constant dense<0.000000e+00> : vector<2x128xf32>
    %254 = tpu.matmul %253, %9, %cst_46 {dimension_numbers = #tpu.dot_dimension_numbers<[1], [0], [0], [1], [0, 0, 1, 1], [], []>} : vector<2x32xbf16>, vector<32x128xbf16>, vector<2x128xf32> -> vector<2x128xf32>
    %255 = arith.addf %252, %254 : vector<2x128xf32>
    %256 = arith.negf %255 : vector<2x128xf32>
    %257 = math.exp %256 : vector<2x128xf32>
    %cst_47 = arith.constant 1.000000e+00 : f32
    %258 = vector.broadcast %cst_47 : f32 to vector<2x128xf32>
    %259 = arith.addf %258, %257 : vector<2x128xf32>
    %260 = arith.divf %258, %259 : vector<2x128xf32>
    %261 = math.tanh %255 : vector<2x128xf32>
    %262 = vector.extract_strided_slice %260 {offsets = [0, 0], sizes = [2, 32], strides = [1, 1]} : vector<2x128xf32> to vector<2x32xf32>
    %263 = vector.extract_strided_slice %260 {offsets = [0, 32], sizes = [2, 32], strides = [1, 1]} : vector<2x128xf32> to vector<2x32xf32>
    %264 = vector.extract_strided_slice %261 {offsets = [0, 64], sizes = [2, 32], strides = [1, 1]} : vector<2x128xf32> to vector<2x32xf32>
    %265 = vector.extract_strided_slice %260 {offsets = [0, 96], sizes = [2, 32], strides = [1, 1]} : vector<2x128xf32> to vector<2x32xf32>
    %266 = arith.mulf %263, %248 : vector<2x32xf32>
    %267 = arith.mulf %262, %264 : vector<2x32xf32>
    %268 = arith.addf %266, %267 : vector<2x32xf32>
    %269 = math.tanh %268 : vector<2x32xf32>
    %270 = arith.mulf %265, %269 : vector<2x32xf32>
    %c0_48 = arith.constant 0 : index
    %c384 = arith.constant 384 : index
    %271 = vector.load %arg7[%c0_48, %c384] : memref<2x512xf32, #tpu.memory_space<vmem>>, vector<2x32xf32>
    tpu.vector_store %arg7[%c0_48, %c384], %270 {strides = array<i32>} : memref<2x512xf32, #tpu.memory_space<vmem>>, vector<2x32xf32>,
    %272 = vector.extract_strided_slice %7 {offsets = [26, 0], sizes = [2, 128], strides = [1, 1]} : vector<32x128xf32> to vector<2x128xf32>
    %273 = arith.truncf %270 : vector<2x32xf32> to vector<2x32xbf16>
    %cst_49 = arith.constant dense<0.000000e+00> : vector<2x128xf32>
    %274 = tpu.matmul %273, %9, %cst_49 {dimension_numbers = #tpu.dot_dimension_numbers<[1], [0], [0], [1], [0, 0, 1, 1], [], []>} : vector<2x32xbf16>, vector<32x128xbf16>, vector<2x128xf32> -> vector<2x128xf32>
    %275 = arith.addf %272, %274 : vector<2x128xf32>
    %276 = arith.negf %275 : vector<2x128xf32>
    %277 = math.exp %276 : vector<2x128xf32>
    %cst_50 = arith.constant 1.000000e+00 : f32
    %278 = vector.broadcast %cst_50 : f32 to vector<2x128xf32>
    %279 = arith.addf %278, %277 : vector<2x128xf32>
    %280 = arith.divf %278, %279 : vector<2x128xf32>
    %281 = math.tanh %275 : vector<2x128xf32>
    %282 = vector.extract_strided_slice %280 {offsets = [0, 0], sizes = [2, 32], strides = [1, 1]} : vector<2x128xf32> to vector<2x32xf32>
    %283 = vector.extract_strided_slice %280 {offsets = [0, 32], sizes = [2, 32], strides = [1, 1]} : vector<2x128xf32> to vector<2x32xf32>
    %284 = vector.extract_strided_slice %281 {offsets = [0, 64], sizes = [2, 32], strides = [1, 1]} : vector<2x128xf32> to vector<2x32xf32>
    %285 = vector.extract_strided_slice %280 {offsets = [0, 96], sizes = [2, 32], strides = [1, 1]} : vector<2x128xf32> to vector<2x32xf32>
    %286 = arith.mulf %283, %268 : vector<2x32xf32>
    %287 = arith.mulf %282, %284 : vector<2x32xf32>
    %288 = arith.addf %286, %287 : vector<2x32xf32>
    %289 = math.tanh %288 : vector<2x32xf32>
    %290 = arith.mulf %285, %289 : vector<2x32xf32>
    %c0_51 = arith.constant 0 : index
    %c416 = arith.constant 416 : index
    %291 = vector.load %arg7[%c0_51, %c416] : memref<2x512xf32, #tpu.memory_space<vmem>>, vector<2x32xf32>
    tpu.vector_store %arg7[%c0_51, %c416], %290 {strides = array<i32>} : memref<2x512xf32, #tpu.memory_space<vmem>>, vector<2x32xf32>,
    %292 = vector.extract_strided_slice %7 {offsets = [28, 0], sizes = [2, 128], strides = [1, 1]} : vector<32x128xf32> to vector<2x128xf32>
    %293 = arith.truncf %290 : vector<2x32xf32> to vector<2x32xbf16>
    %cst_52 = arith.constant dense<0.000000e+00> : vector<2x128xf32>
    %294 = tpu.matmul %293, %9, %cst_52 {dimension_numbers = #tpu.dot_dimension_numbers<[1], [0], [0], [1], [0, 0, 1, 1], [], []>} : vector<2x32xbf16>, vector<32x128xbf16>, vector<2x128xf32> -> vector<2x128xf32>
    %295 = arith.addf %292, %294 : vector<2x128xf32>
    %296 = arith.negf %295 : vector<2x128xf32>
    %297 = math.exp %296 : vector<2x128xf32>
    %cst_53 = arith.constant 1.000000e+00 : f32
    %298 = vector.broadcast %cst_53 : f32 to vector<2x128xf32>
    %299 = arith.addf %298, %297 : vector<2x128xf32>
    %300 = arith.divf %298, %299 : vector<2x128xf32>
    %301 = math.tanh %295 : vector<2x128xf32>
    %302 = vector.extract_strided_slice %300 {offsets = [0, 0], sizes = [2, 32], strides = [1, 1]} : vector<2x128xf32> to vector<2x32xf32>
    %303 = vector.extract_strided_slice %300 {offsets = [0, 32], sizes = [2, 32], strides = [1, 1]} : vector<2x128xf32> to vector<2x32xf32>
    %304 = vector.extract_strided_slice %301 {offsets = [0, 64], sizes = [2, 32], strides = [1, 1]} : vector<2x128xf32> to vector<2x32xf32>
    %305 = vector.extract_strided_slice %300 {offsets = [0, 96], sizes = [2, 32], strides = [1, 1]} : vector<2x128xf32> to vector<2x32xf32>
    %306 = arith.mulf %303, %288 : vector<2x32xf32>
    %307 = arith.mulf %302, %304 : vector<2x32xf32>
    %308 = arith.addf %306, %307 : vector<2x32xf32>
    %309 = math.tanh %308 : vector<2x32xf32>
    %310 = arith.mulf %305, %309 : vector<2x32xf32>
    %c0_54 = arith.constant 0 : index
    %c448 = arith.constant 448 : index
    %311 = vector.load %arg7[%c0_54, %c448] : memref<2x512xf32, #tpu.memory_space<vmem>>, vector<2x32xf32>
    tpu.vector_store %arg7[%c0_54, %c448], %310 {strides = array<i32>} : memref<2x512xf32, #tpu.memory_space<vmem>>, vector<2x32xf32>,
    %312 = vector.extract_strided_slice %7 {offsets = [30, 0], sizes = [2, 128], strides = [1, 1]} : vector<32x128xf32> to vector<2x128xf32>
    %313 = arith.truncf %310 : vector<2x32xf32> to vector<2x32xbf16>
    %cst_55 = arith.constant dense<0.000000e+00> : vector<2x128xf32>
    %314 = tpu.matmul %313, %9, %cst_55 {dimension_numbers = #tpu.dot_dimension_numbers<[1], [0], [0], [1], [0, 0, 1, 1], [], []>} : vector<2x32xbf16>, vector<32x128xbf16>, vector<2x128xf32> -> vector<2x128xf32>
    %315 = arith.addf %312, %314 : vector<2x128xf32>
    %316 = arith.negf %315 : vector<2x128xf32>
    %317 = math.exp %316 : vector<2x128xf32>
    %cst_56 = arith.constant 1.000000e+00 : f32
    %318 = vector.broadcast %cst_56 : f32 to vector<2x128xf32>
    %319 = arith.addf %318, %317 : vector<2x128xf32>
    %320 = arith.divf %318, %319 : vector<2x128xf32>
    %321 = math.tanh %315 : vector<2x128xf32>
    %322 = vector.extract_strided_slice %320 {offsets = [0, 0], sizes = [2, 32], strides = [1, 1]} : vector<2x128xf32> to vector<2x32xf32>
    %323 = vector.extract_strided_slice %320 {offsets = [0, 32], sizes = [2, 32], strides = [1, 1]} : vector<2x128xf32> to vector<2x32xf32>
    %324 = vector.extract_strided_slice %321 {offsets = [0, 64], sizes = [2, 32], strides = [1, 1]} : vector<2x128xf32> to vector<2x32xf32>
    %325 = vector.extract_strided_slice %320 {offsets = [0, 96], sizes = [2, 32], strides = [1, 1]} : vector<2x128xf32> to vector<2x32xf32>
    %326 = arith.mulf %323, %308 : vector<2x32xf32>
    %327 = arith.mulf %322, %324 : vector<2x32xf32>
    %328 = arith.addf %326, %327 : vector<2x32xf32>
    %329 = math.tanh %328 : vector<2x32xf32>
    %330 = arith.mulf %325, %329 : vector<2x32xf32>
    %c0_57 = arith.constant 0 : index
    %c480 = arith.constant 480 : index
    %331 = vector.load %arg7[%c0_57, %c480] : memref<2x512xf32, #tpu.memory_space<vmem>>, vector<2x32xf32>
    tpu.vector_store %arg7[%c0_57, %c480], %330 {strides = array<i32>} : memref<2x512xf32, #tpu.memory_space<vmem>>, vector<2x32xf32>,
    tpu.wait_dma2 semaphore(%arg9 : memref<!tpu.dma_semaphore, #tpu.memory_space<semaphore_mem>>) src(%arg5 : memref<512x128xf32, #tpu.memory_space<any>>) dst(%arg8 : memref<512x128xf32, #tpu.memory_space<vmem>>)
    %c0_58 = arith.constant 0 : index
    %c0_59 = arith.constant 0 : index
    %332 = vector.load %arg7[%c0_58, %c0_59] : memref<2x512xf32, #tpu.memory_space<vmem>>, vector<2x512xf32>
    %c0_60 = arith.constant 0 : index
    %c0_61 = arith.constant 0 : index
    %333 = vector.load %arg8[%c0_60, %c0_61] : memref<512x128xf32, #tpu.memory_space<vmem>>, vector<512x128xf32>
    %cst_62 = arith.constant dense<0.000000e+00> : vector<2x128xf32>
    %334 = tpu.matmul %332, %333, %cst_62 {dimension_numbers = #tpu.dot_dimension_numbers<[1], [0], [0], [1], [0, 0, 1, 1], [], []>} : vector<2x512xf32>, vector<512x128xf32>, vector<2x128xf32> -> vector<2x128xf32>
    %c0_63 = arith.constant 0 : index
    %c0_64 = arith.constant 0 : index
    %335 = vector.load %arg4[%c0_63, %c0_64] : memref<1x128xf32, #tpu.memory_space<vmem>>, vector<1x128xf32>
    %336 = vector.broadcast %335 : vector<1x128xf32> to vector<2x128xf32>
    %337 = arith.addf %334, %336 : vector<2x128xf32>
    %c0_65 = arith.constant 0 : index
    %c0_66 = arith.constant 0 : index
    %338 = vector.load %arg6[%c0_65, %c0_66] : memref<2x128xf32, #tpu.memory_space<vmem>>, vector<2x128xf32>
    tpu.vector_store %arg6[%c0_65, %c0_66], %337 {strides = array<i32>} : memref<2x128xf32, #tpu.memory_space<vmem>>, vector<2x128xf32>,
    return
  }
}

</mosaic_0001>

<bundles_post_ra>
// kernel: tpu_custom_call.1
= control target key start
LH: loop header
LB: loop body
LE: loop exit
PB: predicated region body
PF: predicated region fallthrough
CT: control target
= control target key end

     0   :  { %vm57_vm0 = vcmask 1043456   ;;  %vm58_vm1 = vcmask 1044480   ;;  %v2364_v3 = vmov 0.0   ;;  %v2365_v9 = vmov 65535   ;;  %s2807_s0 = inlined_call_operand.vmem [shape: f32[32,9], index: 0, kind: input, shape index: {}]   ;;  %s2808_s1 = inlined_call_operand.vmem [shape: f32[9,128], index: 1, kind: input, shape index: {}]   ;;  %s2809_s2 = inlined_call_operand.vmem [shape: f32[32,128], index: 2, kind: input, shape index: {}]   ;;  %s2810_s3 = inlined_call_operand.vmem [shape: f32[1,128], index: 3, kind: input, shape index: {}]   ;;  %s2811_s4 = inlined_call_operand.vmem [shape: f32[1,128], index: 4, kind: input, shape index: {}]   ;;  %s2812_s5 = inlined_call_operand.hbm [shape: f32[512,128], index: 5, kind: input, shape index: {}]   ;;  %s2813_s6 = inlined_call_operand.hbm [shape: f32[2,128], index: 6, kind: output, shape index: {}]  }
   0x1   :  { %v113_v0 = vld [vmem:[%s2809_s2] sm:$0xff]  ;;  %v114_v1 = vld [vmem:[%s2809_s2 + $0x8] sm:$0xff]  ;;  %1985 = vmatprep.subr.bf16.mxu1 %v2364_v3  ;;  %v115_v6 = vld [vmem:[%s2809_s2 + $0x10] sm:$0xff]  ;;  %v59_v10 = vsel %vm57_vm0, 4294967295, %v2365_v9  ;;  %vm50_vm2 = vcmask 72704   ;;  %vm2366_vm3 = vmmov 0  }
   0x2   :  { %v40_v2 = vld [vmem:[%s2808_s1] sm:$0xff]  ;;  %v2419_v4 = vpack.c.bf16 %v114_v1, %v113_v0  ;;  %v41_v5 = vld [vmem:[%s2808_s1 + $0x8] sm:$0x1]  ;;  %v116_v7 = vld [vmem:[%s2809_s2 + $0x18] sm:$0xff]  ;;  %v60_v13 = vsel %vm58_vm1, %v59_v10, 0  ;;  %1989 = vmatprep.mubr.msk.bf16.mxu1 %vm2366_vm3, %v2364_v3 }
   0x3   :  { %v42_v8 = vpack.c.bf16 %v41_v5, %v40_v2  ;;  %v34_v11 = vld [vmem:[%s2807_s0] sm:$0xff]  ;;  %v35_v12 = vld [vmem:[%s2807_s0 + $0x8] sm:$0xff]  ;;  %v2437_v14 = vpack.c.bf16 %v116_v7, %v115_v6  ;;  %v36_v16 = vld [vmem:[%s2807_s0 + $0x10] sm:$0xff] }
   0x4   :  { %1986 = vmatpush3.bf16.msra.mxu1 %v2419_v4  ;;  %v38_v15 = vpack.c.bf16 %v35_v12, %v34_v11  ;;  %v37_v17 = vld [vmem:[%s2807_s0 + $0x18] sm:$0xff] }
   0x5   :  { %11 = vsyncpa [#allocation6], 0  ;;  %v62_v18 = vand.u32 %v60_v13, %v42_v8  ;;  %1987 = vmatprep.subr.bf16.mxu1 %v2364_v3  ;;  %v39_v19 = vpack.c.bf16 %v37_v17, %v36_v16  ;;  %v2367_v20 = vmov 0   ;;  %v1822_v21 = vld [vmem:[%s2810_s3] ss:$0 sm:$0xff]  ;;  %s2368_s3 = smov 64  }
   0x6   :  { %1981 = vmatprep.mubr.msk.bf16.mxu0 %vm50_vm2, %v38_v15  ;;  %s2369_s16 = smov 32   ;;  %vm119_vm4 = vcmask 261120   ;;  %vm199_vm5 = vcmask 254976   ;;  %vm291_vm6 = vcmask 517376   ;;  %s2371_s17 = smov 96  }
   0x7   :  { %1979 = vmatprep.subr.bf16.mxu0 %v62_v18  ;;  %s2372_s18 = smov [#allocation3]   ;;  %s2316_s22 = scalar_lea.hbm %s2812_s5, 8192 }
   0x8   :  { %1980 = vmatpush3.bf16.msra.mxu0 %v62_v18  ;;  %1988 = vmatpush3.bf16.msra.mxu1 %v2437_v14  ;;  %s30_s19 = sshll.u32 %s2372_s18, 4  ;;  %p2317_p0 = scmp.ne.s32.totalorder %s2812_s5, %s2316_s22  ;;  %s31_s19 = int_to_ptr.vmem [resolvable:$true] %s30_s19 }
   0x9   :  { %1993 = vmatprep.subr.bf16.mxu0 %v2364_v3  ;;  %2001 = vmatprep.subr.bf16.mxu1 %v2364_v3  ;;  %p2320_p1 = scmp.lt.u32.totalorder %s2316_s22, %s2812_s5 }
   0xb   :  { %1982 = vmatmul.mubr.msk.bf16.vlgmr.msra.gmra.mrb[0].mxu0 %vm50_vm2, %v39_v19  ;;  %1990 = vmatmul.mubr.bf16.vlgmr.msra.gmra.mrb[0].mxu1 %v2367_v20  ;;  %p2322_p2 = pnand %p2320_p1, %p2317_p0 }
   0xc   :  { %1994 = vmatpush3.bf16.msra.mxu0 %v2419_v4  ;;  %1997 = vmatprep.mubr.msk.bf16.mxu0 %vm2366_vm3, %v2364_v3 }
   0xd   :  { %1995 = vmatprep.subr.bf16.mxu0 %v2364_v3  ;;  %2002 = vmatpush3.bf16.msra.mxu1 %v2419_v4 }
   0xe   :  { %2003 = vmatprep.subr.bf16.mxu1 %v2364_v3  ;;  %2005 = vmatprep.mubr.msk.bf16.mxu1 %vm2366_vm3, %v2364_v3 }
  0x10   :  { %1996 = vmatpush3.bf16.msra.mxu0 %v2437_v14 }
  0x11   :  { %2004 = vmatpush3.bf16.msra.mxu1 %v2437_v14  ;;  %2009 = vmatprep.subr.bf16.mxu0 %v2364_v3 }
  0x12   :  { %2017 = vmatprep.subr.bf16.mxu1 %v2364_v3 }
  0xde   :  { %v1983_v22 = vpop.f32.mrb[0].mxu0  ;;  %v157_v23 = vpop.f32.mrb[0].mxu1 }
  0xdf   :  { %v2468_v24 = vadd.f32 %v1983_v22, %v1822_v21  ;;  %v98_v25 = vpop.f32.mrb[1].mxu0  ;;  %v1991_v26 = vpop.f32.mrb[1].mxu1 }
  0xe0   :  { %v2470_v27 = vadd.f32 %v1822_v21, %v98_v25  ;;  %v1984_v28 = vpop.f32.mrb[2].mxu0  ;;  %v160_v29 = vpop.f32.mrb[2].mxu1 }
  0xe1   :  { %v2472_v30 = vadd.f32 %v1984_v28, %v1822_v21  ;;  %v101_v31 = vpop.f32.mrb[3].mxu0  ;;  %v1992_v32 = vpop.f32.mrb[3].mxu1 }
  0xe2   :  { %v163_v33 = vadd.f32 %v157_v23, %v2470_v27  ;;  %v2475_v34 = vadd.f32 %v1822_v21, %v101_v31 }
  0xe4   :  { %2187 = vtanh.f32 %v163_v33  ;;  %v1825_v36 = vmul.f32 -1.442695, %v163_v33 }
  0xe6   :  { %2189 = vpow2.f32 %v1825_v36 }
  0xee   :  { %v2188_v35 = vpop.eup %2187 }
  0xef   :  { %173 = vrot.lane.b32.xlu0 %v2188_v35, %s2368_s3 }
  0xf0   :  { %v2190_v37 = vpop.eup %2189 }
  0xf1   :  { %v167_v38 = vadd.f32 1.0, %v2190_v37 }
  0xf3   :  { %2191 = vrcp.f32 %v167_v38 }
  0xfd   :  { %v2192_v39 = vpop.eup %2191 }
  0xfe   :  { %v171_v42 = vmul.f32 0.0, %v2192_v39 }
 0x161   :  { %v174_v40 = vpop.permute.xlu0 %173 }
 0x162   :  { %v176_v41 = vmul.f32 %v2192_v39, %v174_v40 }
 0x164   :  { %178 = vrot.lane.b32.xlu0 %v176_v41, %s2369_s16 }
 0x1d6   :  { %v179_v43 = vpop.permute.xlu0 %178 }
 0x1d7   :  { %v181_v44 = vadd.f32 %v179_v43, %v171_v42 }
 0x1d9   :  { %2193 = vtanh.f32 %v181_v44  ;;  %v260_v63 = vrot.slane %v181_v44, 6 }
 0x1e3   :  { %v2194_v45 = vpop.eup %2193 }
 0x1e4   :  { %184 = vrot.lane.b32.xlu1 %v2194_v45, %s2368_s3 }
 0x256   :  { %v185_v46 = vpop.permute.xlu1 %184 }
 0x257   :  { %v2480_v47 = vmul.f32 %v2192_v39, %v185_v46 }
 0x259   :  { %v201_v48 = vpack.c.bf16 %v2480_v47, %v2480_v47 }
 0x25b   :  { %203 = vrot.lane.b32.xlu1 %v201_v48, %s2369_s16 }
 0x2cd   :  { %v204_v49 = vpop.permute.xlu1 %203 }
 0x2ce   :  { %1998 = vmatmul.mubr.msk.bf16.vlgmr.msra.gmra.mrb[4].mxu0 %vm119_vm4, %v204_v49 }
 0x2cf   :  { %2010 = vmatpush3.bf16.msra.mxu0 %v2419_v4  ;;  %2013 = vmatprep.mubr.msk.bf16.mxu0 %vm2366_vm3, %v2364_v3 }
 0x2d0   :  { %2011 = vmatprep.subr.bf16.mxu0 %v2364_v3 }
 0x2d3   :  { %2012 = vmatpush3.bf16.msra.mxu0 %v2437_v14 }
 0x2d4   :  { %2025 = vmatprep.subr.bf16.mxu0 %v2364_v3 }
 0x3a1   :  { %v242_v50 = vpop.f32.mrb[4].mxu0 }
 0x3a2   :  { %v249_v51 = vrot.slane %v242_v50, 6  ;;  %v1999_v52 = vpop.f32.mrb[5].mxu0 }
 0x3a3   :  { %v245_v53 = vpop.f32.mrb[6].mxu0 }
 0x3a4   :  { %v251_v54 = vadd.f32 %v249_v51, %v2470_v27  ;;  %v2000_v55 = vpop.f32.mrb[7].mxu0 }
 0x3a6   :  { %2195 = vtanh.f32 %v251_v54  ;;  %v1827_v57 = vmul.f32 -1.442695, %v251_v54 }
 0x3a8   :  { %2197 = vpow2.f32 %v1827_v57 }
 0x3b0   :  { %v2196_v56 = vpop.eup %2195 }
 0x3b1   :  { %264 = vrot.lane.b32.xlu0 %v2196_v56, %s2368_s3 }
 0x3b2   :  { %v2198_v58 = vpop.eup %2197 }
 0x3b3   :  { %v255_v59 = vadd.f32 1.0, %v2198_v58 }
 0x3b5   :  { %2199 = vrcp.f32 %v255_v59 }
 0x3bf   :  { %v2200_v60 = vpop.eup %2199 }
 0x3c0   :  { %v262_v0 = vmul.f32 %v2200_v60, %v260_v63 }
 0x423   :  { %v265_v61 = vpop.permute.xlu0 %264 }
 0x424   :  { %v267_v62 = vmul.f32 %v2200_v60, %v265_v61 }
 0x426   :  { %269 = vrot.lane.b32.xlu1 %v267_v62, %s2369_s16 }
 0x498   :  { %v270_v1 = vpop.permute.xlu1 %269 }
 0x499   :  { %v272_v2 = vadd.f32 %v270_v1, %v262_v0 }
 0x49b   :  { %2201 = vtanh.f32 %v272_v2  ;;  %v353_v26 = vrot.slane %v272_v2, 6 }
 0x4a5   :  { %v2202_v5 = vpop.eup %2201 }
 0x4a6   :  { %275 = vrot.lane.b32.xlu0 %v2202_v5, %s2368_s3 }
 0x518   :  { %v276_v6 = vpop.permute.xlu0 %275 }
 0x519   :  { %v2496_v7 = vmul.f32 %v2200_v60, %v276_v6 }
 0x51b   :  { %v293_v8 = vpack.c.bf16 %v2496_v7, %v2496_v7 }
 0x51d   :  { %v295_v9 = vrot.slane %v293_v8, 1 }
 0x51f   :  { %296 = vrot.lane.b32.xlu1 %v295_v9, %s2369_s16 }
 0x591   :  { %v297_v10 = vpop.permute.xlu1 %296 }
 0x592   :  { %2006 = vmatmul.mubr.msk.bf16.vlgmr.msra.gmra.mrb[4].mxu1 %vm119_vm4, %v297_v10 }
 0x593   :  { %2018 = vmatpush3.bf16.msra.mxu1 %v2419_v4  ;;  %2021 = vmatprep.mubr.msk.bf16.mxu1 %vm2366_vm3, %v2364_v3 }
 0x594   :  { %2019 = vmatprep.subr.bf16.mxu1 %v2364_v3 }
 0x597   :  { %2020 = vmatpush3.bf16.msra.mxu1 %v2437_v14 }
 0x598   :  { %2033 = vmatprep.subr.bf16.mxu1 %v2364_v3 }
 0x665   :  { %v335_v11 = vpop.f32.mrb[4].mxu1 }
 0x666   :  { %v342_v12 = vrot.slane %v335_v11, 4  ;;  %v2007_v13 = vpop.f32.mrb[5].mxu1 }
 0x667   :  { %v338_v15 = vpop.f32.mrb[6].mxu1 }
 0x668   :  { %v344_v16 = vadd.f32 %v342_v12, %v2470_v27  ;;  %v2008_v17 = vpop.f32.mrb[7].mxu1 }
 0x66a   :  { %2203 = vtanh.f32 %v344_v16  ;;  %v1829_v19 = vmul.f32 -1.442695, %v344_v16 }
 0x66c   :  { %2205 = vpow2.f32 %v1829_v19 }
 0x674   :  { %v2204_v18 = vpop.eup %2203 }
 0x675   :  { %357 = vrot.lane.b32.xlu0 %v2204_v18, %s2368_s3 }
 0x676   :  { %v2206_v20 = vpop.eup %2205 }
 0x677   :  { %v348_v21 = vadd.f32 1.0, %v2206_v20 }
 0x679   :  { %2207 = vrcp.f32 %v348_v21 }
 0x683   :  { %v2208_v22 = vpop.eup %2207 }
 0x684   :  { %v355_v28 = vmul.f32 %v2208_v22, %v353_v26 }
 0x6e7   :  { %v358_v23 = vpop.permute.xlu0 %357 }
 0x6e8   :  { %v360_v25 = vmul.f32 %v2208_v22, %v358_v23 }
 0x6ea   :  { %362 = vrot.lane.b32.xlu1 %v360_v25, %s2369_s16 }
 0x75c   :  { %v363_v29 = vpop.permute.xlu1 %362 }
 0x75d   :  { %v365_v31 = vadd.f32 %v363_v29, %v355_v28 }
 0x75f   :  { %2209 = vtanh.f32 %v365_v31  ;;  %v446_v53 = vrot.slane %v365_v31, 6 }
 0x769   :  { %v2210_v32 = vpop.eup %2209 }
 0x76a   :  { %368 = vrot.lane.b32.xlu0 %v2210_v32, %s2368_s3 }
 0x7dc   :  { %v369_v33 = vpop.permute.xlu0 %368 }
 0x7dd   :  { %v2512_v35 = vmul.f32 %v2208_v22, %v369_v33 }
 0x7df   :  { %v386_v36 = vpack.c.bf16 %v2512_v35, %v2512_v35 }
 0x7e1   :  { %v388_v37 = vrot.slane %v386_v36, 2 }
 0x7e3   :  { %389 = vrot.lane.b32.xlu1 %v388_v37, %s2369_s16 }
 0x855   :  { %v390_v38 = vpop.permute.xlu1 %389 }
 0x856   :  { %2014 = vmatmul.mubr.msk.bf16.vlgmr.msra.gmra.mrb[8].mxu0 %vm119_vm4, %v390_v38 }
 0x857   :  { %2026 = vmatpush3.bf16.msra.mxu0 %v2419_v4  ;;  %2029 = vmatprep.mubr.msk.bf16.mxu0 %vm2366_vm3, %v2364_v3 }
 0x858   :  { %2027 = vmatprep.subr.bf16.mxu0 %v2364_v3 }
 0x85b   :  { %2028 = vmatpush3.bf16.msra.mxu0 %v2437_v14 }
 0x85c   :  { %2041 = vmatprep.subr.bf16.mxu0 %v2364_v3 }
 0x929   :  { %v428_v39 = vpop.f32.mrb[8].mxu0 }
 0x92a   :  { %v435_v40 = vrot.slane %v428_v39, 2  ;;  %v2015_v41 = vpop.f32.mrb[9].mxu0 }
 0x92b   :  { %v431_v42 = vpop.f32.mrb[10].mxu0 }
 0x92c   :  { %v437_v43 = vadd.f32 %v435_v40, %v2470_v27  ;;  %v2016_v44 = vpop.f32.mrb[11].mxu0 }
 0x92e   :  { %2211 = vtanh.f32 %v437_v43  ;;  %v1831_v46 = vmul.f32 -1.442695, %v437_v43 }
 0x930   :  { %2213 = vpow2.f32 %v1831_v46 }
 0x938   :  { %v2212_v45 = vpop.eup %2211 }
 0x939   :  { %450 = vrot.lane.b32.xlu0 %v2212_v45, %s2368_s3 }
 0x93a   :  { %v2214_v48 = vpop.eup %2213 }
 0x93b   :  { %v441_v49 = vadd.f32 1.0, %v2214_v48 }
 0x93d   :  { %2215 = vrcp.f32 %v441_v49 }
 0x947   :  { %v2216_v50 = vpop.eup %2215 }
 0x948   :  { %v448_v54 = vmul.f32 %v2216_v50, %v446_v53 }
 0x9ab   :  { %v451_v51 = vpop.permute.xlu0 %450 }
 0x9ac   :  { %v453_v52 = vmul.f32 %v2216_v50, %v451_v51 }
 0x9ae   :  { %455 = vrot.lane.b32.xlu1 %v453_v52, %s2369_s16 }
 0xa20   :  { %v456_v55 = vpop.permute.xlu1 %455 }
 0xa21   :  { %v458_v56 = vadd.f32 %v456_v55, %v448_v54 }
 0xa23   :  { %2217 = vtanh.f32 %v458_v56  ;;  %v535_v13 = vrot.slane %v458_v56, 6 }
 0xa2d   :  { %v2218_v27 = vpop.eup %2217 }
 0xa2e   :  { %461 = vrot.lane.b32.xlu0 %v2218_v27, %s2368_s3 }
 0xaa0   :  { %v462_v57 = vpop.permute.xlu0 %461 }
 0xaa1   :  { %v2528_v58 = vmul.f32 %v2216_v50, %v462_v57 }
 0xaa3   :  { %v478_v59 = vpack.c.bf16 %v2528_v58, %v2528_v58 }
 0xaa5   :  { %v480_v60 = vrot.slane %v478_v59, 3 }
 0xaa7   :  { %481 = vrot.lane.b32.xlu1 %v480_v60, %s2369_s16 }
 0xb19   :  { %v482_v61 = vpop.permute.xlu1 %481 }
 0xb1a   :  { %2022 = vmatmul.mubr.msk.bf16.vlgmr.msra.gmra.mrb[8].mxu1 %vm119_vm4, %v482_v61 }
 0xb1b   :  { %2034 = vmatpush3.bf16.msra.mxu1 %v2419_v4  ;;  %2037 = vmatprep.mubr.msk.bf16.mxu1 %vm2366_vm3, %v2364_v3 }
 0xb1c   :  { %2035 = vmatprep.subr.bf16.mxu1 %v2364_v3 }
 0xb1f   :  { %2036 = vmatpush3.bf16.msra.mxu1 %v2437_v14 }
 0xb20   :  { %2049 = vmatprep.subr.bf16.mxu1 %v2364_v3 }
 0xbed   :  { %v520_v62 = vpop.f32.mrb[8].mxu1 }
 0xbee   :  { %v526_v63 = vadd.f32 %v520_v62, %v2475_v34  ;;  %v2023_v0 = vpop.f32.mrb[9].mxu1 }
 0xbef   :  { %v523_v1 = vpop.f32.mrb[10].mxu1 }
 0xbf0   :  { %2219 = vtanh.f32 %v526_v63  ;;  %v2024_v2 = vpop.f32.mrb[11].mxu1  ;;  %v1833_v6 = vmul.f32 -1.442695, %v526_v63 }
 0xbf2   :  { %2221 = vpow2.f32 %v1833_v6 }
 0xbfa   :  { %v2220_v5 = vpop.eup %2219 }
 0xbfb   :  { %539 = vrot.lane.b32.xlu0 %v2220_v5, %s2368_s3 }
 0xbfc   :  { %v2222_v8 = vpop.eup %2221 }
 0xbfd   :  { %v530_v9 = vadd.f32 1.0, %v2222_v8 }
 0xbff   :  { %2223 = vrcp.f32 %v530_v9 }
 0xc09   :  { %v2224_v10 = vpop.eup %2223 }
 0xc0a   :  { %v537_v15 = vmul.f32 %v2224_v10, %v535_v13 }
 0xc6d   :  { %v540_v11 = vpop.permute.xlu0 %539 }
 0xc6e   :  { %v542_v12 = vmul.f32 %v2224_v10, %v540_v11 }
 0xc70   :  { %544 = vrot.lane.b32.xlu1 %v542_v12, %s2369_s16 }
 0xce2   :  { %v545_v16 = vpop.permute.xlu1 %544 }
 0xce3   :  { %v547_v17 = vadd.f32 %v545_v16, %v537_v15 }
 0xce5   :  { %2225 = vtanh.f32 %v547_v17  ;;  %v625_v41 = vrot.slane %v547_v17, 6 }
 0xcef   :  { %v2226_v18 = vpop.eup %2225 }
 0xcf0   :  { %550 = vrot.lane.b32.xlu0 %v2226_v18, %s2368_s3 }
 0xd62   :  { %v551_v19 = vpop.permute.xlu0 %550 }
 0xd63   :  { %v2544_v20 = vmul.f32 %v2224_v10, %v551_v19 }
 0xd65   :  { %v566_v21 = vpack.c.bf16 %v2544_v20, %v2544_v20 }
 0xd67   :  { %568 = vrot.lane.b32.xlu1 %v566_v21, %s2369_s16 }
 0xdd9   :  { %v569_v22 = vpop.permute.xlu1 %568 }
 0xdda   :  { %2030 = vmatmul.mubr.msk.bf16.vlgmr.msra.gmra.mrb[12].mxu0 %vm119_vm4, %v569_v22 }
 0xddb   :  { %2042 = vmatpush3.bf16.msra.mxu0 %v2419_v4  ;;  %2045 = vmatprep.mubr.msk.bf16.mxu0 %vm2366_vm3, %v2364_v3 }
 0xddc   :  { %2043 = vmatprep.subr.bf16.mxu0 %v2364_v3 }
 0xddf   :  { %2044 = vmatpush3.bf16.msra.mxu0 %v2437_v14 }
 0xde0   :  { %2057 = vmatprep.subr.bf16.mxu0 %v2364_v3 }
 0xead   :  { %v607_v23 = vpop.f32.mrb[12].mxu0 }
 0xeae   :  { %v614_v25 = vrot.slane %v607_v23, 6  ;;  %v2031_v26 = vpop.f32.mrb[13].mxu0 }
 0xeaf   :  { %v610_v28 = vpop.f32.mrb[14].mxu0 }
 0xeb0   :  { %v616_v29 = vadd.f32 %v614_v25, %v2475_v34  ;;  %v2032_v31 = vpop.f32.mrb[15].mxu0 }
 0xeb2   :  { %2227 = vtanh.f32 %v616_v29  ;;  %v1835_v33 = vmul.f32 -1.442695, %v616_v29 }
 0xeb4   :  { %2229 = vpow2.f32 %v1835_v33 }
 0xebc   :  { %v2228_v32 = vpop.eup %2227 }
 0xebd   :  { %629 = vrot.lane.b32.xlu0 %v2228_v32, %s2368_s3 }
 0xebe   :  { %v2230_v36 = vpop.eup %2229 }
 0xebf   :  { %v620_v37 = vadd.f32 1.0, %v2230_v36 }
 0xec1   :  { %2231 = vrcp.f32 %v620_v37 }
 0xecb   :  { %v2232_v38 = vpop.eup %2231 }
 0xecc   :  { %v627_v42 = vmul.f32 %v2232_v38, %v625_v41 }
 0xf2f   :  { %v630_v39 = vpop.permute.xlu0 %629 }
 0xf30   :  { %v632_v40 = vmul.f32 %v2232_v38, %v630_v39 }
 0xf32   :  { %634 = vrot.lane.b32.xlu1 %v632_v40, %s2369_s16 }
 0xfa4   :  { %v635_v43 = vpop.permute.xlu1 %634 }
 0xfa5   :  { %v637_v44 = vadd.f32 %v635_v43, %v627_v42 }
 0xfa7   :  { %2233 = vtanh.f32 %v637_v44  ;;  %v717_v1 = vrot.slane %v637_v44, 6 }
 0xfb1   :  { %v2234_v45 = vpop.eup %2233 }
 0xfb2   :  { %640 = vrot.lane.b32.xlu0 %v2234_v45, %s2368_s3 }
0x1024   :  { %v641_v46 = vpop.permute.xlu0 %640 }
0x1025   :  { %v2560_v48 = vmul.f32 %v2232_v38, %v641_v46 }
0x1027   :  { %v657_v49 = vpack.c.bf16 %v2560_v48, %v2560_v48 }
0x1029   :  { %v659_v50 = vrot.slane %v657_v49, 1 }
0x102b   :  { %660 = vrot.lane.b32.xlu1 %v659_v50, %s2369_s16 }
0x109d   :  { %v661_v51 = vpop.permute.xlu1 %660 }
0x109e   :  { %2038 = vmatmul.mubr.msk.bf16.vlgmr.msra.gmra.mrb[12].mxu1 %vm119_vm4, %v661_v51 }
0x109f   :  { %2050 = vmatpush3.bf16.msra.mxu1 %v2419_v4  ;;  %2053 = vmatprep.mubr.msk.bf16.mxu1 %vm2366_vm3, %v2364_v3 }
0x10a0   :  { %2051 = vmatprep.subr.bf16.mxu1 %v2364_v3 }
0x10a3   :  { %2052 = vmatpush3.bf16.msra.mxu1 %v2437_v14 }
0x10a4   :  { %2065 = vmatprep.subr.bf16.mxu1 %v2364_v3 }
0x1171   :  { %v699_v52 = vpop.f32.mrb[12].mxu1 }
0x1172   :  { %v706_v53 = vrot.slane %v699_v52, 4  ;;  %v2039_v54 = vpop.f32.mrb[13].mxu1 }
0x1173   :  { %v702_v55 = vpop.f32.mrb[14].mxu1 }
0x1174   :  { %v708_v56 = vadd.f32 %v706_v53, %v2475_v34  ;;  %v2040_v27 = vpop.f32.mrb[15].mxu1 }
0x1176   :  { %2235 = vtanh.f32 %v708_v56  ;;  %v1837_v59 = vmul.f32 -1.442695, %v708_v56 }
0x1178   :  { %2237 = vpow2.f32 %v1837_v59 }
0x1180   :  { %v2236_v57 = vpop.eup %2235 }
0x1181   :  { %721 = vrot.lane.b32.xlu0 %v2236_v57, %s2368_s3 }
0x1182   :  { %v2238_v60 = vpop.eup %2237 }
0x1183   :  { %v712_v61 = vadd.f32 1.0, %v2238_v60 }
0x1185   :  { %2239 = vrcp.f32 %v712_v61 }
0x118f   :  { %v2240_v62 = vpop.eup %2239 }
0x1190   :  { %v719_v2 = vmul.f32 %v2240_v62, %v717_v1 }
0x11f3   :  { %v722_v63 = vpop.permute.xlu0 %721 }
0x11f4   :  { %v724_v0 = vmul.f32 %v2240_v62, %v722_v63 }
0x11f6   :  { %726 = vrot.lane.b32.xlu1 %v724_v0, %s2369_s16 }
0x1268   :  { %v727_v5 = vpop.permute.xlu1 %726 }
0x1269   :  { %v729_v6 = vadd.f32 %v727_v5, %v719_v2 }
0x126b   :  { %2241 = vtanh.f32 %v729_v6  ;;  %v809_v32 = vrot.slane %v729_v6, 6 }
0x1275   :  { %v2242_v8 = vpop.eup %2241 }
0x1276   :  { %732 = vrot.lane.b32.xlu0 %v2242_v8, %s2368_s3 }
0x12e8   :  { %v733_v9 = vpop.permute.xlu0 %732 }
0x12e9   :  { %v2576_v10 = vmul.f32 %v2240_v62, %v733_v9 }
0x12eb   :  { %v749_v11 = vpack.c.bf16 %v2576_v10, %v2576_v10 }
0x12ed   :  { %v751_v12 = vrot.slane %v749_v11, 2 }
0x12ef   :  { %752 = vrot.lane.b32.xlu1 %v751_v12, %s2369_s16 }
0x1361   :  { %v753_v13 = vpop.permute.xlu1 %752 }
0x1362   :  { %2046 = vmatmul.mubr.msk.bf16.vlgmr.msra.gmra.mrb[16].mxu0 %vm119_vm4, %v753_v13 }
0x1363   :  { %2058 = vmatpush3.bf16.msra.mxu0 %v2419_v4  ;;  %2061 = vmatprep.mubr.msk.bf16.mxu0 %vm2366_vm3, %v2364_v3 }
0x1364   :  { %2059 = vmatprep.subr.bf16.mxu0 %v2364_v3 }
0x1367   :  { %2060 = vmatpush3.bf16.msra.mxu0 %v2437_v14 }
0x1368   :  { %2073 = vmatprep.subr.bf16.mxu0 %v2364_v3 }
0x1435   :  { %v791_v15 = vpop.f32.mrb[16].mxu0 }
0x1436   :  { %v798_v16 = vrot.slane %v791_v15, 2  ;;  %v2047_v17 = vpop.f32.mrb[17].mxu0 }
0x1437   :  { %v794_v18 = vpop.f32.mrb[18].mxu0 }
0x1438   :  { %v800_v19 = vadd.f32 %v798_v16, %v2475_v34  ;;  %v2048_v21 = vpop.f32.mrb[19].mxu0 }
0x143a   :  { %2243 = vtanh.f32 %v800_v19  ;;  %v1839_v23 = vmul.f32 -1.442695, %v800_v19 }
0x143c   :  { %2245 = vpow2.f32 %v1839_v23 }
0x1444   :  { %v2244_v22 = vpop.eup %2243 }
0x1445   :  { %813 = vrot.lane.b32.xlu0 %v2244_v22, %s2368_s3 }
0x1446   :  { %v2246_v25 = vpop.eup %2245 }
0x1447   :  { %v804_v26 = vadd.f32 1.0, %v2246_v25 }
0x1449   :  { %2247 = vrcp.f32 %v804_v26 }
0x1453   :  { %v2248_v28 = vpop.eup %2247 }
0x1454   :  { %v811_v33 = vmul.f32 %v2248_v28, %v809_v32 }
0x14b7   :  { %v814_v29 = vpop.permute.xlu0 %813 }
0x14b8   :  { %v816_v31 = vmul.f32 %v2248_v28, %v814_v29 }
0x14ba   :  { %818 = vrot.lane.b32.xlu1 %v816_v31, %s2369_s16 }
0x152c   :  { %v819_v36 = vpop.permute.xlu1 %818 }
0x152d   :  { %v821_v37 = vadd.f32 %v819_v36, %v811_v33 }
0x152f   :  { %2249 = vtanh.f32 %v821_v37  ;;  %v897_v27 = vrot.slane %v821_v37, 6 }
0x1539   :  { %v2250_v34 = vpop.eup %2249 }
0x153a   :  { %824 = vrot.lane.b32.xlu0 %v2250_v34, %s2368_s3 }
0x15ac   :  { %v825_v38 = vpop.permute.xlu0 %824 }
0x15ad   :  { %v2592_v39 = vmul.f32 %v2248_v28, %v825_v38 }
0x15af   :  { %v840_v40 = vpack.c.bf16 %v2592_v39, %v2592_v39 }
0x15b1   :  { %v842_v41 = vrot.slane %v840_v40, 3 }
0x15b3   :  { %843 = vrot.lane.b32.xlu1 %v842_v41, %s2369_s16 }
0x1625   :  { %v844_v42 = vpop.permute.xlu1 %843 }
0x1626   :  { %2054 = vmatmul.mubr.msk.bf16.vlgmr.msra.gmra.mrb[16].mxu1 %vm119_vm4, %v844_v42 }
0x1627   :  { %2066 = vmatpush3.bf16.msra.mxu1 %v2419_v4  ;;  %2069 = vmatprep.mubr.msk.bf16.mxu1 %vm2366_vm3, %v2364_v3 }
0x1628   :  { %2067 = vmatprep.subr.bf16.mxu1 %v2364_v3 }
0x162b   :  { %2068 = vmatpush3.bf16.msra.mxu1 %v2437_v14 }
0x162c   :  { %2081 = vmatprep.subr.bf16.mxu1 %v2364_v3 }
0x16f9   :  { %v882_v43 = vpop.f32.mrb[16].mxu1 }
0x16fa   :  { %v888_v44 = vadd.f32 %v882_v43, %v2468_v24  ;;  %v2055_v45 = vpop.f32.mrb[17].mxu1 }
0x16fb   :  { %v885_v46 = vpop.f32.mrb[18].mxu1 }
0x16fc   :  { %2251 = vtanh.f32 %v888_v44  ;;  %v2056_v49 = vpop.f32.mrb[19].mxu1  ;;  %v1841_v51 = vmul.f32 -1.442695, %v888_v44 }
0x16fe   :  { %2253 = vpow2.f32 %v1841_v51 }
0x1706   :  { %v2252_v50 = vpop.eup %2251 }
0x1707   :  { %901 = vrot.lane.b32.xlu0 %v2252_v50, %s2368_s3 }
0x1708   :  { %v2254_v52 = vpop.eup %2253 }
0x1709   :  { %v892_v53 = vadd.f32 1.0, %v2254_v52 }
0x170b   :  { %2255 = vrcp.f32 %v892_v53 }
0x1715   :  { %v2256_v54 = vpop.eup %2255 }
0x1716   :  { %v899_v57 = vmul.f32 %v2256_v54, %v897_v27 }
0x1779   :  { %v902_v55 = vpop.permute.xlu0 %901 }
0x177a   :  { %v904_v56 = vmul.f32 %v2256_v54, %v902_v55 }
0x177c   :  { %906 = vrot.lane.b32.xlu1 %v904_v56, %s2369_s16 }
0x17ee   :  { %v907_v59 = vpop.permute.xlu1 %906 }
0x17ef   :  { %v909_v60 = vadd.f32 %v907_v59, %v899_v57 }
0x17f1   :  { %2257 = vtanh.f32 %v909_v60  ;;  %v987_v21 = vrot.slane %v909_v60, 6 }
0x17fb   :  { %v2258_v61 = vpop.eup %2257 }
0x17fc   :  { %912 = vrot.lane.b32.xlu0 %v2258_v61, %s2368_s3 }
0x186e   :  { %v913_v62 = vpop.permute.xlu0 %912 }
0x186f   :  { %v2608_v63 = vmul.f32 %v2256_v54, %v913_v62 }
0x1871   :  { %v928_v0 = vpack.c.bf16 %v2608_v63, %v2608_v63 }
0x1873   :  { %930 = vrot.lane.b32.xlu1 %v928_v0, %s2369_s16 }
0x18e5   :  { %v931_v1 = vpop.permute.xlu1 %930 }
0x18e6   :  { %2062 = vmatmul.mubr.msk.bf16.vlgmr.msra.gmra.mrb[20].mxu0 %vm119_vm4, %v931_v1 }
0x18e7   :  { %2074 = vmatpush3.bf16.msra.mxu0 %v2419_v4  ;;  %2077 = vmatprep.mubr.msk.bf16.mxu0 %vm2366_vm3, %v2364_v3 }
0x18e8   :  { %2075 = vmatprep.subr.bf16.mxu0 %v2364_v3 }
0x18eb   :  { %2076 = vmatpush3.bf16.msra.mxu0 %v2437_v14 }
0x18ec   :  { %2089 = vmatprep.subr.bf16.mxu0 %v2364_v3 }
0x19b9   :  { %v969_v2 = vpop.f32.mrb[20].mxu0 }
0x19ba   :  { %v976_v5 = vrot.slane %v969_v2, 6  ;;  %v2063_v6 = vpop.f32.mrb[21].mxu0 }
0x19bb   :  { %v972_v8 = vpop.f32.mrb[22].mxu0 }
0x19bc   :  { %v978_v9 = vadd.f32 %v976_v5, %v2468_v24  ;;  %v2064_v11 = vpop.f32.mrb[23].mxu0 }
0x19be   :  { %2259 = vtanh.f32 %v978_v9  ;;  %v1843_v13 = vmul.f32 -1.442695, %v978_v9 }
0x19c0   :  { %2261 = vpow2.f32 %v1843_v13 }
0x19c8   :  { %v2260_v12 = vpop.eup %2259 }
0x19c9   :  { %991 = vrot.lane.b32.xlu0 %v2260_v12, %s2368_s3 }
0x19ca   :  { %v2262_v15 = vpop.eup %2261 }
0x19cb   :  { %v982_v16 = vadd.f32 1.0, %v2262_v15 }
0x19cd   :  { %2263 = vrcp.f32 %v982_v16 }
0x19d7   :  { %v2264_v17 = vpop.eup %2263 }
0x19d8   :  { %v989_v22 = vmul.f32 %v2264_v17, %v987_v21 }
0x1a3b   :  { %v992_v18 = vpop.permute.xlu0 %991 }
0x1a3c   :  { %v994_v19 = vmul.f32 %v2264_v17, %v992_v18 }
0x1a3e   :  { %996 = vrot.lane.b32.xlu1 %v994_v19, %s2369_s16 }
0x1ab0   :  { %v997_v23 = vpop.permute.xlu1 %996 }
0x1ab1   :  { %v999_v25 = vadd.f32 %v997_v23, %v989_v22 }
0x1ab3   :  { %2265 = vtanh.f32 %v999_v25  ;;  %v1079_v51 = vrot.slane %v999_v25, 6 }
0x1abd   :  { %v2266_v26 = vpop.eup %2265 }
0x1abe   :  { %1002 = vrot.lane.b32.xlu0 %v2266_v26, %s2368_s3 }
0x1b30   :  { %v1003_v28 = vpop.permute.xlu0 %1002 }
0x1b31   :  { %v2624_v29 = vmul.f32 %v2264_v17, %v1003_v28 }
0x1b33   :  { %v1019_v31 = vpack.c.bf16 %v2624_v29, %v2624_v29 }
0x1b35   :  { %v1021_v32 = vrot.slane %v1019_v31, 1 }
0x1b37   :  { %1022 = vrot.lane.b32.xlu1 %v1021_v32, %s2369_s16 }
0x1ba9   :  { %v1023_v33 = vpop.permute.xlu1 %1022 }
0x1baa   :  { %2070 = vmatmul.mubr.msk.bf16.vlgmr.msra.gmra.mrb[20].mxu1 %vm119_vm4, %v1023_v33 }
0x1bab   :  { %2082 = vmatpush3.bf16.msra.mxu1 %v2419_v4  ;;  %2085 = vmatprep.mubr.msk.bf16.mxu1 %vm2366_vm3, %v2364_v3 }
0x1bac   :  { %2083 = vmatprep.subr.bf16.mxu1 %v2364_v3 }
0x1baf   :  { %2084 = vmatpush3.bf16.msra.mxu1 %v2437_v14 }
0x1bb0   :  { %2097 = vmatprep.subr.bf16.mxu1 %v2364_v3 }
0x1c7d   :  { %v1061_v36 = vpop.f32.mrb[20].mxu1 }
0x1c7e   :  { %v1068_v37 = vrot.slane %v1061_v36, 4  ;;  %v2071_v34 = vpop.f32.mrb[21].mxu1 }
0x1c7f   :  { %v1064_v38 = vpop.f32.mrb[22].mxu1 }
0x1c80   :  { %v1070_v40 = vadd.f32 %v1068_v37, %v2468_v24  ;;  %v2072_v41 = vpop.f32.mrb[23].mxu1 }
0x1c82   :  { %2267 = vtanh.f32 %v1070_v40  ;;  %v1845_v43 = vmul.f32 -1.442695, %v1070_v40 }
0x1c84   :  { %2269 = vpow2.f32 %v1845_v43 }
0x1c8c   :  { %v2268_v42 = vpop.eup %2267 }
0x1c8d   :  { %1083 = vrot.lane.b32.xlu0 %v2268_v42, %s2368_s3 }
0x1c8e   :  { %v2270_v44 = vpop.eup %2269 }
0x1c8f   :  { %v1074_v45 = vadd.f32 1.0, %v2270_v44 }
0x1c91   :  { %2271 = vrcp.f32 %v1074_v45 }
0x1c9b   :  { %v2272_v46 = vpop.eup %2271 }
0x1c9c   :  { %v1081_v52 = vmul.f32 %v2272_v46, %v1079_v51 }
0x1cff   :  { %v1084_v49 = vpop.permute.xlu0 %1083 }
0x1d00   :  { %v1086_v50 = vmul.f32 %v2272_v46, %v1084_v49 }
0x1d02   :  { %1088 = vrot.lane.b32.xlu1 %v1086_v50, %s2369_s16 }
0x1d74   :  { %v1089_v53 = vpop.permute.xlu1 %1088 }
0x1d75   :  { %v1091_v54 = vadd.f32 %v1089_v53, %v1081_v52 }
0x1d77   :  { %2273 = vtanh.f32 %v1091_v54  ;;  %v1171_v16 = vrot.slane %v1091_v54, 6 }
0x1d81   :  { %v2274_v55 = vpop.eup %2273 }
0x1d82   :  { %1094 = vrot.lane.b32.xlu0 %v2274_v55, %s2368_s3 }
0x1df4   :  { %v1095_v56 = vpop.permute.xlu0 %1094 }
0x1df5   :  { %v2640_v27 = vmul.f32 %v2272_v46, %v1095_v56 }
0x1df7   :  { %v1111_v57 = vpack.c.bf16 %v2640_v27, %v2640_v27 }
0x1df9   :  { %v1113_v59 = vrot.slane %v1111_v57, 2 }
0x1dfb   :  { %1114 = vrot.lane.b32.xlu1 %v1113_v59, %s2369_s16 }
0x1e6d   :  { %v1115_v60 = vpop.permute.xlu1 %1114 }
0x1e6e   :  { %2078 = vmatmul.mubr.msk.bf16.vlgmr.msra.gmra.mrb[24].mxu0 %vm119_vm4, %v1115_v60 }
0x1e6f   :  { %2090 = vmatpush3.bf16.msra.mxu0 %v2419_v4  ;;  %2093 = vmatprep.mubr.msk.bf16.mxu0 %vm2366_vm3, %v2364_v3 }
0x1e70   :  { %2091 = vmatprep.subr.bf16.mxu0 %v2364_v3 }
0x1e73   :  { %2092 = vmatpush3.bf16.msra.mxu0 %v2437_v14 }
0x1e74   :  { %2105 = vmatprep.subr.bf16.mxu0 %v2364_v3 }
0x1f41   :  { %v1153_v61 = vpop.f32.mrb[24].mxu0 }
0x1f42   :  { %v1160_v62 = vrot.slane %v1153_v61, 2  ;;  %v2079_v0 = vpop.f32.mrb[25].mxu0 }
0x1f43   :  { %v1156_v1 = vpop.f32.mrb[26].mxu0 }
0x1f44   :  { %v1162_v2 = vadd.f32 %v1160_v62, %v2468_v24  ;;  %v2080_v5 = vpop.f32.mrb[27].mxu0 }
0x1f46   :  { %2275 = vtanh.f32 %v1162_v2  ;;  %v1847_v8 = vmul.f32 -1.442695, %v1162_v2 }
0x1f48   :  { %2277 = vpow2.f32 %v1847_v8 }
0x1f50   :  { %v2276_v6 = vpop.eup %2275 }
0x1f51   :  { %1175 = vrot.lane.b32.xlu0 %v2276_v6, %s2368_s3 }
0x1f52   :  { %v2278_v9 = vpop.eup %2277 }
0x1f53   :  { %v1166_v11 = vadd.f32 1.0, %v2278_v9 }
0x1f55   :  { %2279 = vrcp.f32 %v1166_v11 }
0x1f5f   :  { %v2280_v12 = vpop.eup %2279 }
0x1f60   :  { %v1173_v17 = vmul.f32 %v2280_v12, %v1171_v16 }
0x1fc3   :  { %v1176_v13 = vpop.permute.xlu0 %1175 }
0x1fc4   :  { %v1178_v15 = vmul.f32 %v2280_v12, %v1176_v13 }
0x1fc6   :  { %1180 = vrot.lane.b32.xlu1 %v1178_v15, %s2369_s16 }
0x2038   :  { %v1181_v18 = vpop.permute.xlu1 %1180 }
0x2039   :  { %v1183_v19 = vadd.f32 %v1181_v18, %v1173_v17 }
0x203b   :  { %2281 = vtanh.f32 %v1183_v19  ;;  %v1259_v44 = vrot.slane %v1183_v19, 6 }
0x2045   :  { %v2282_v24 = vpop.eup %2281 }
0x2046   :  { %1186 = vrot.lane.b32.xlu0 %v2282_v24, %s2368_s3 }
0x20b8   :  { %v1187_v21 = vpop.permute.xlu0 %1186 }
0x20b9   :  { %v2656_v22 = vmul.f32 %v2280_v12, %v1187_v21 }
0x20bb   :  { %v1202_v23 = vpack.c.bf16 %v2656_v22, %v2656_v22 }
0x20bd   :  { %v1204_v25 = vrot.slane %v1202_v23, 3 }
0x20bf   :  { %1205 = vrot.lane.b32.xlu1 %v1204_v25, %s2369_s16 }
0x2131   :  { %v1206_v26 = vpop.permute.xlu1 %1205 }
0x2132   :  { %2086 = vmatmul.mubr.msk.bf16.vlgmr.msra.gmra.mrb[24].mxu1 %vm119_vm4, %v1206_v26 }
0x2133   :  { %2098 = vmatpush3.bf16.msra.mxu1 %v2419_v4  ;;  %2101 = vmatprep.mubr.msk.bf16.mxu1 %vm2366_vm3, %v2364_v3 }
0x2134   :  { %2099 = vmatprep.subr.bf16.mxu1 %v2364_v3 }
0x2137   :  { %2100 = vmatpush3.bf16.msra.mxu1 %v2437_v14 }
0x2205   :  { %v1244_v28 = vpop.f32.mrb[24].mxu1 }
0x2206   :  { %v1250_v31 = vadd.f32 %v1244_v28, %v2472_v30  ;;  %v2087_v32 = vpop.f32.mrb[25].mxu1 }
0x2207   :  { %v1247_v33 = vpop.f32.mrb[26].mxu1 }
0x2208   :  { %2283 = vtanh.f32 %v1250_v31  ;;  %v2088_v36 = vpop.f32.mrb[27].mxu1  ;;  %v1849_v34 = vmul.f32 -1.442695, %v1250_v31 }
0x220a   :  { %2285 = vpow2.f32 %v1849_v34 }
0x2212   :  { %v2284_v37 = vpop.eup %2283 }
0x2213   :  { %1263 = vrot.lane.b32.xlu0 %v2284_v37, %s2368_s3 }
0x2214   :  { %v2286_v38 = vpop.eup %2285 }
0x2215   :  { %v1254_v40 = vadd.f32 1.0, %v2286_v38 }
0x2217   :  { %2287 = vrcp.f32 %v1254_v40 }
0x2221   :  { %v2288_v41 = vpop.eup %2287 }
0x2222   :  { %v1261_v45 = vmul.f32 %v2288_v41, %v1259_v44 }
0x2285   :  { %v1264_v42 = vpop.permute.xlu0 %1263 }
0x2286   :  { %v1266_v43 = vmul.f32 %v2288_v41, %v1264_v42 }
0x2288   :  { %1268 = vrot.lane.b32.xlu1 %v1266_v43, %s2369_s16 }
0x22fa   :  { %v1269_v46 = vpop.permute.xlu1 %1268 }
0x22fb   :  { %v1271_v49 = vadd.f32 %v1269_v46, %v1261_v45 }
0x22fd   :  { %2289 = vtanh.f32 %v1271_v49 }
0x2307   :  { %v2290_v50 = vpop.eup %2289 }
0x2308   :  { %1274 = vrot.lane.b32.xlu0 %v2290_v50, %s2368_s3 }
0x237a   :  { %v1275_v51 = vpop.permute.xlu0 %1274 }
0x237b   :  { %v2671_v52 = vmul.f32 %v2288_v41, %v1275_v51 }
0x237d   :  { %v1290_v53 = vpack.c.bf16 %v2671_v52, %v2671_v52 }
0x237f   :  { %1292 = vrot.lane.b32.xlu1 %v1290_v53, %s2369_s16 }
0x23f1   :  { %v1293_v54 = vpop.permute.xlu1 %1292 }
0x23f2   :  { %2094 = vmatmul.mubr.msk.bf16.vlgmr.msra.gmra.mrb[28].mxu0 %vm119_vm4, %v1293_v54 }
0x23f3   :  { %2106 = vmatpush3.bf16.msra.mxu0 %v2419_v4  ;;  %2109 = vmatprep.mubr.msk.bf16.mxu0 %vm2366_vm3, %v2364_v3 }
0x23f4   :  { %2107 = vmatprep.subr.bf16.mxu0 %v2364_v3 }
0x23f7   :  { %2108 = vmatpush3.bf16.msra.mxu0 %v2437_v14  ;;  %v1349_v14 = vrot.slane %v1271_v49, 6 }
0x24c5   :  { %v1331_v55 = vpop.f32.mrb[28].mxu0 }
0x24c6   :  { %v1338_v56 = vrot.slane %v1331_v55, 6  ;;  %v2095_v57 = vpop.f32.mrb[29].mxu0 }
0x24c7   :  { %v1334_v59 = vpop.f32.mrb[30].mxu0  ;;  %v2370_v57 = vmov 1983009808  }
0x24c8   :  { %v1340_v60 = vadd.f32 %v1338_v56, %v2472_v30  ;;  %v2096_v61 = vpop.f32.mrb[31].mxu0  ;;  %v190_v59 = vunpack.c.l.s4 %v2370_v57 }
0x24ca   :  { %2291 = vtanh.f32 %v1340_v60  ;;  %v1851_v0 = vmul.f32 -1.442695, %v1340_v60  ;;  %v192_v60 = vlaneseq  ;;  %v191_v61 = vunpack.c.0.s8 %v190_v59 }
0x24cc   :  { %2293 = vpow2.f32 %v1851_v0 }
0x24d4   :  { %v2292_v62 = vpop.eup %2291 }
0x24d5   :  { %1353 = vrot.lane.b32.xlu0 %v2292_v62, %s2368_s3  ;;  %v193_v62 = vshrl.u32 %v192_v60, 7 }
0x24d6   :  { %v2294_v4 = vpop.eup %2293 }
0x24d7   :  { %v1344_v1 = vadd.f32 1.0, %v2294_v4  ;;  %v2702_v4 = vsub.s32 %v191_v61, %v193_v62 }
0x24d9   :  { %2295 = vrcp.f32 %v1344_v1  ;;  %v561_v1 = vrot.slane %v2544_v20, %v2702_v4 }
0x24e3   :  { %v2296_v2 = vpop.eup %2295 }
0x24e4   :  { %v1351_v6 = vmul.f32 %v2296_v2, %v1349_v14 }
0x2547   :  { %v1354_v3 = vpop.permute.xlu0 %1353 }
0x2548   :  { %v1356_v5 = vmul.f32 %v2296_v2, %v1354_v3 }
0x254a   :  { %1358 = vrot.lane.b32.xlu1 %v1356_v5, %s2369_s16 }
0x25bc   :  { %v1359_v8 = vpop.permute.xlu1 %1358 }
0x25bd   :  { %v1361_v9 = vadd.f32 %v1359_v8, %v1351_v6 }
0x25bf   :  { %2297 = vtanh.f32 %v1361_v9  ;;  %v1441_v34 = vrot.slane %v1361_v9, 6 }
0x25c9   :  { %v2298_v11 = vpop.eup %2297 }
0x25ca   :  { %1364 = vrot.lane.b32.xlu0 %v2298_v11, %s2368_s3 }
0x263c   :  { %v1365_v12 = vpop.permute.xlu0 %1364 }
0x263d   :  { %v1367_v13 = vmul.f32 %v2296_v2, %v1365_v12  ;;  %v1285_v2 = vrot.slane %v2671_v52, %v2702_v4  ;;  %v195_v12 = vrot.slane %v2480_v47, %v2702_v4  ;;  %v1013_v47 = vrot.slane %v2624_v29, %v2702_v4 }
0x263f   :  { %v1381_v15 = vpack.c.bf16 %v1367_v13, %v1367_v13  ;;  %v1375_v5 = vrot.slane %v1367_v13, %v2702_v4 }
0x2641   :  { %v1383_v16 = vrot.slane %v1381_v15, 1  ;;  %v1376_v14 = vcombine.high %v1375_v5, %v1375_v5  ;;  %v286_v15 = vrot.slane %v2496_v7, %v2702_v4  ;;  %v373_v7 = vcombine.high %v2512_v35, %v2512_v35 }
0x2643   :  { %1384 = vrot.lane.b32.xlu1 %v1383_v16, %s2369_s16  ;;  %v923_v16 = vrot.slane %v2608_v63, %v2702_v4  ;;  %v1099_v63 = vcombine.high %v2640_v27, %v2640_v27 }
0x2645   :  { %v1106_v29 = vrot.slane %v1099_v63, %v2702_v4 }
0x26b5   :  { %v1385_v17 = vpop.permute.xlu1 %1384 }
0x26b6   :  { %2102 = vmatmul.mubr.msk.bf16.vlgmr.msra.gmra.mrb[28].mxu1 %vm119_vm4, %v1385_v17 }
0x2789   :  { %v1423_v18 = vpop.f32.mrb[28].mxu1 }
0x278a   :  { %v1430_v19 = vrot.slane %v1423_v18, 4  ;;  %v2103_v24 = vpop.f32.mrb[29].mxu1  ;;  %v287_v18 = vcombine.high %v286_v15, %v286_v15 }
0x278b   :  { %v1426_v21 = vpop.f32.mrb[30].mxu1  ;;  %v1014_v24 = vcombine.high %v1013_v47, %v1013_v47 }
0x278c   :  { %v1432_v23 = vadd.f32 %v1430_v19, %v2472_v30  ;;  %v2104_v25 = vpop.f32.mrb[31].mxu1  ;;  %v380_v21 = vrot.slane %v373_v7, %v2702_v4 }
0x278e   :  { %2299 = vtanh.f32 %v1432_v23  ;;  %v1853_v28 = vmul.f32 -1.442695, %v1432_v23 }
0x2790   :  { %2301 = vpow2.f32 %v1853_v28 }
0x2798   :  { %v2300_v26 = vpop.eup %2299 }
0x2799   :  { %1445 = vrot.lane.b32.xlu0 %v2300_v26, %s2368_s3 }
0x279a   :  { %v2302_v31 = vpop.eup %2301 }
0x279b   :  { %v1436_v32 = vadd.f32 1.0, %v2302_v31 }
0x279d   :  { %2303 = vrcp.f32 %v1436_v32 }
0x27a7   :  { %v2304_v33 = vpop.eup %2303 }
0x27a8   :  { %v1443_v38 = vmul.f32 %v2304_v33, %v1441_v34 }
0x280b   :  { %v1446_v36 = vpop.permute.xlu0 %1445 }
0x280c   :  { %v1448_v37 = vmul.f32 %v2304_v33, %v1446_v36 }
0x280e   :  { %1450 = vrot.lane.b32.xlu1 %v1448_v37, %s2369_s16 }
0x2880   :  { %v1451_v40 = vpop.permute.xlu1 %1450 }
0x2881   :  { %v2691_v41 = vadd.f32 %v1451_v40, %v1443_v38 }
0x2883   :  { %2305 = vtanh.f32 %v2691_v41  ;;  %v1533_v23 = vrot.slane %v2691_v41, 6 }
0x288d   :  { %v2306_v42 = vpop.eup %2305 }
0x288e   :  { %1456 = vrot.lane.b32.xlu0 %v2306_v42, %s2368_s3 }
0x2900   :  { %v1457_v43 = vpop.permute.xlu0 %1456 }
0x2901   :  { %v2695_v44 = vmul.f32 %v2304_v33, %v1457_v43 }
0x2903   :  { %v1473_v45 = vpack.c.bf16 %v2695_v44, %v2695_v44 }
0x2905   :  { %v1475_v46 = vrot.slane %v1473_v45, 2 }
0x2907   :  { %1476 = vrot.lane.b32.xlu1 %v1475_v46, %s2369_s16 }
0x2979   :  { %v1477_v49 = vpop.permute.xlu1 %1476 }
0x297a   :  { %2110 = vmatmul.mubr.msk.bf16.vlgmr.msra.gmra.mrb[32].mxu0 %vm119_vm4, %v1477_v49 }
0x2a4d   :  { %v1515_v50 = vpop.f32.mrb[32].mxu0 }
0x2a4e   :  { %v1522_v51 = vrot.slane %v1515_v50, 2  ;;  %v2111_v53 = vpop.f32.mrb[33].mxu0 }
0x2a4f   :  { %v1518_v54 = vpop.f32.mrb[34].mxu0 }
0x2a50   :  { %v1524_v55 = vadd.f32 %v1522_v51, %v2472_v30  ;;  %v2112_v56 = vpop.f32.mrb[35].mxu0  ;;  %v651_v30 = vrot.slane %v2560_v48, %v2702_v4 }
0x2a52   :  { %2307 = vtanh.f32 %v1524_v55  ;;  %v652_v3 = vcombine.high %v651_v30, %v651_v30  ;;  %v1855_v6 = vmul.f32 -1.442695, %v1524_v55 }
0x2a54   :  { %2309 = vpow2.f32 %v1855_v6 }
0x2a5c   :  { %v2308_v0 = vpop.eup %2307 }
0x2a5d   :  { %1537 = vrot.lane.b32.xlu0 %v2308_v0, %s2368_s3 }
0x2a5e   :  { %v2310_v20 = vpop.eup %2309 }
0x2a5f   :  { %v1528_v8 = vadd.f32 1.0, %v2310_v20 }
0x2a61   :  { %562 = vrot.lane.b32.xlu0 %v561_v1, %s2369_s16  ;;  %2311 = vrcp.f32 %v1528_v8 }
0x2a65   :  { %1286 = vrot.lane.b32.xlu0 %v1285_v2, %s2369_s16 }
0x2a69   :  { %653 = vrot.lane.b32.xlu0 %v652_v3, %s2368_s3 }
0x2a6b   :  { %v2716_v9 = vpop.eup %2311 }
0x2a6c   :  { %v1535_v35 = vmul.f32 %v2716_v9, %v1533_v23 }
0x2a6d   :  { %1377 = vrot.lane.b32.xlu0 %v1376_v14, %s2368_s3 }
0x2acf   :  { %v1538_v48 = vpop.permute.xlu0 %1537 }
0x2ad0   :  { %v1540_v52 = vmul.f32 %v2716_v9, %v1538_v48 }
0x2ad2   :  { %1542 = vrot.lane.b32.xlu1 %v1540_v52, %s2369_s16 }
0x2ad3   :  { %v563_v11 = vpop.permute.xlu0 %562 }
0x2ad4   :  { %565 = vst.msk [vmem:[#allocation2 + $0x2] sm:$0x3] %vm199_vm5, %v563_v11 }
0x2ad6   :  { %196 = vrot.lane.b32.xlu1 %v195_v12, %s2369_s16 }
0x2ad7   :  { %v1287_v13 = vpop.permute.xlu0 %1286 }
0x2ad8   :  { %1289 = vst.msk [vmem:[#allocation2 + $0x6] sm:$0x3] %vm199_vm5, %v1287_v13 }
0x2ada   :  { %924 = vrot.lane.b32.xlu1 %v923_v16, %s2369_s16 }
0x2adb   :  { %v654_v17 = vpop.permute.xlu0 %653 }
0x2adc   :  { %656 = vst.msk [vmem:[#allocation2 + $0x2] sm:$0x3] %vm291_vm6, %v654_v17 }
0x2ade   :  { %288 = vrot.lane.b32.xlu1 %v287_v18, %s2368_s3 }
0x2adf   :  { %v1378_v19 = vpop.permute.xlu0 %1377 }
0x2ae0   :  { %1380 = vst.msk [vmem:[#allocation2 + $0x6] sm:$0x3] %vm291_vm6, %v1378_v19 }
0x2ae2   :  { %1015 = vrot.lane.b32.xlu1 %v1014_v24, %s2368_s3 }
0x2ae6   :  { %381 = vrot.lane.b32.xlu1 %v380_v21, %s2371_s17 }
0x2aea   :  { %1107 = vrot.lane.b32.xlu1 %v1106_v29, %s2371_s17 }
0x2b44   :  { %v1543_v25 = vpop.permute.xlu1 %1542 }
0x2b45   :  { %v1545_v26 = vadd.f32 %v1543_v25, %v1535_v35 }
0x2b47   :  { %2313 = vtanh.f32 %v1545_v26 }
0x2b48   :  { %v197_v28 = vpop.permute.xlu1 %196 }
0x2b49   :  { %200 = vst.msk [vmem:[#allocation2] sm:$0x3] %vm199_vm5, %v197_v28 }
0x2b4c   :  { %v925_v27 = vpop.permute.xlu1 %924 }
0x2b4d   :  { %927 = vst.msk [vmem:[#allocation2 + $0x4] sm:$0x3] %vm199_vm5, %v925_v27 }
0x2b4e   :  { %2325 = shalt.err (!%p2322_p2)  }
0x2b4f   :  { %s2326_s27 = scalar_lea.vmem %s31_s19, 8192  ;;  %p2331_p4 = scmp.lt.s32.totalorder %s31_s19, %s31_s19 }
0x2b50   :  { %p2327_p3 = scmp.ne.s32.totalorder %s31_s19, %s2326_s27  ;;  %p2332_p5 = scmp.lt.s32.totalorder %s2326_s27, %s2326_s27 }
0x2b52   :  { %p2333_p6 = por %p2332_p5, %p2331_p4 }
0x2b54   :  { %p2334_p7 = pnand %p2333_p6, %p2327_p3 }
0x2b56   :  { %2337 = shalt.err (!%p2334_p7)  }
0x2b57   :  { %33 = dma.hbm_to_vmem [thread:$0]  %s2812_s5, 8192, %s31_s19, [#allocation4]  ;;  %v466_v31 = vcombine.high %v2528_v58, %v2528_v58  ;;  %v737_v32 = vcombine.high %v2576_v10, %v2576_v10  ;;  %v289_v33 = vpop.permute.xlu1 %288  ;;  %v2314_v36 = vpop.eup %2313  ;;  %v1191_v34 = vcombine.high %v2656_v22, %v2656_v22  ;;  %v1461_v38 = vcombine.high %v2695_v44, %v2695_v44 }
0x2b58   :  { %292 = vst.msk [vmem:[#allocation2] sm:$0x3] %vm291_vm6, %v289_v33  ;;  %1548 = vrot.lane.b32.xlu0 %v2314_v36, %s2368_s3  ;;  %vm384_vm7 = vcmask 779776   ;;  %vm476_vm8 = vcmask 1042176   ;;  %v829_v45 = vcombine.high %v2592_v39, %v2592_v39 }
0x2b59   :  { %v473_v37 = vrot.slane %v466_v31, %v2702_v4  ;;  %v744_v58 = vrot.slane %v737_v32, %v2702_v4  ;;  %v1198_v41 = vrot.slane %v1191_v34, %v2702_v4  ;;  %v1468_v43 = vrot.slane %v1461_v38, %v2702_v4 }
0x2b5a   :  { %v836_v46 = vrot.slane %v829_v45, %v2702_v4 }
0x2b5b   :  { %v1016_v40 = vpop.permute.xlu1 %1015  ;;  %v474_v10 = vcombine.high %v473_v37, %v473_v37  ;;  %v1199_v22 = vcombine.high %v1198_v41, %v1198_v41 }
0x2b5c   :  { %1018 = vst.msk [vmem:[#allocation2 + $0x4] sm:$0x3] %vm291_vm6, %v1016_v40  ;;  %745 = vrot.lane.b32.xlu0 %v744_v58, %s2371_s17  ;;  %v837_v53 = vcombine.high %v836_v46, %v836_v46 }
0x2b5f   :  { %v382_v42 = vpop.permute.xlu1 %381 }
0x2b60   :  { %385 = vst.msk [vmem:[#allocation2] sm:$0x3] %vm384_vm7, %v382_v42  ;;  %1469 = vrot.lane.b32.xlu0 %v1468_v43, %s2371_s17 }
0x2b61   :  { %477 = vst.msk [vmem:[#allocation2] sm:$0x3] %vm476_vm8, %v474_v10 }
0x2b63   :  { %v1108_v44 = vpop.permute.xlu1 %1107 }
0x2b64   :  { %1110 = vst.msk [vmem:[#allocation2 + $0x4] sm:$0x3] %vm384_vm7, %v1108_v44 }
0x2b65   :  { %1201 = vst.msk [vmem:[#allocation2 + $0x4] sm:$0x3] %vm476_vm8, %v1199_v22 }
0x2bca   :  { %v1549_v49 = vpop.permute.xlu0 %1548 }
0x2bcb   :  { %v1551_v50 = vmul.f32 %v2716_v9, %v1549_v49 }
0x2bcd   :  { %v1553_v51 = vcombine.high %v1551_v50, %v1551_v50 }
0x2bce   :  { %v746_v54 = vpop.permute.xlu0 %745 }
0x2bcf   :  { %v1560_v55 = vrot.slane %v1553_v51, %v2702_v4  ;;  %748 = vst.msk [vmem:[#allocation2 + $0x2] sm:$0x3] %vm384_vm7, %v746_v54 }
0x2bd0   :  { %839 = vst.msk [vmem:[#allocation2 + $0x2] sm:$0x3] %vm476_vm8, %v837_v53 }
0x2bd1   :  { %v1561_v56 = vcombine.high %v1560_v55, %v1560_v55 }
0x2bd2   :  { %v1470_v57 = vpop.permute.xlu0 %1469 }
0x2bd3   :  { %1472 = vst.msk [vmem:[#allocation2 + $0x6] sm:$0x3] %vm384_vm7, %v1470_v57 }
0x2bd4   :  { %1563 = vst.msk [vmem:[#allocation2 + $0x6] sm:$0x3] %vm476_vm8, %v1561_v56 }
0x2bd5   :  { %2360 = dma.done.wait [#allocation4], 8192 }
0x2bd6   :  { %2361 = vsyncadd [#allocation4], 4294959104  ;;  %v1584_v39 = vld [vmem:[#allocation3 + $0x80] sm:$0xff]  ;;  %v1585_v59 = vld [vmem:[#allocation3 + $0x88] sm:$0xff]  ;;  %s2373_s7 = smov [#allocation5]  }
0x2bd7   :  { %v1568_v60 = vld [vmem:[#allocation3] sm:$0xff]  ;;  %v2113_v61 = vpack.c.bf16 %v1585_v59, %v1584_v39  ;;  %v1569_v62 = vld [vmem:[#allocation3 + $0x8] sm:$0xff]  ;;  %v1586_v14 = vld [vmem:[#allocation3 + $0x90] sm:$0xff]  ;;  %s1808_s8 = sshll.u32 %s2373_s7, 4  ;;  %s1809_s8 = int_to_ptr.vmem [resolvable:$true] %s1808_s8 }
0x2bd8   :  { %v1616_v0 = vld [vmem:[#allocation3 + $0x180] sm:$0xff]  ;;  %v1617_v1 = vld [vmem:[#allocation3 + $0x188] sm:$0xff]  ;;  %v2115_v30 = vpack.c.bf16 %v1569_v62, %v1568_v60  ;;  %v1587_v20 = vld [vmem:[#allocation3 + $0x98] sm:$0xff]  ;;  %s2338_s9 = scalar_lea.vmem %s1809_s8, 32  ;;  %p2343_p9 = scmp.lt.s32.totalorder %s1809_s8, %s1809_s8 }
0x2bd9   :  { %v2145_v2 = vpack.c.bf16 %v1617_v1, %v1616_v0  ;;  %v1600_v3 = vld [vmem:[#allocation3 + $0x100] sm:$0xff]  ;;  %v1601_v5 = vld [vmem:[#allocation3 + $0x108] sm:$0xff]  ;;  %2114 = vmatprep.subr.bf16.mxu1 %v2113_v61  ;;  %v1570_v8 = vld [vmem:[#allocation3 + $0x10] sm:$0xff]  ;;  %v2117_v48 = vpack.c.bf16 %v1587_v20, %v1586_v14  ;;  %p2339_p8 = scmp.ne.s32.totalorder %s1809_s8, %s2338_s9  ;;  %p2344_p10 = scmp.lt.s32.totalorder %s2338_s9, %s2338_s9 }
0x2bda   :  { %v2147_v6 = vpack.c.bf16 %v1601_v5, %v1600_v3  ;;  %v1571_v9 = vld [vmem:[#allocation3 + $0x18] sm:$0xff]  ;;  %2116 = vmatpush3.bf16.msra.mxu1 %v2115_v30  ;;  %v1618_v11 = vld [vmem:[#allocation3 + $0x190] sm:$0xff]  ;;  %v1588_v17 = vld [vmem:[#allocation3 + $0xa0] sm:$0xff] }
0x2bdb   :  { %2146 = vmatprep.subr.bf16.mxu0 %v2145_v2  ;;  %v2119_v52 = vpack.c.bf16 %v1571_v9, %v1570_v8  ;;  %v1619_v12 = vld [vmem:[#allocation3 + $0x198] sm:$0xff]  ;;  %v1602_v13 = vld [vmem:[#allocation3 + $0x110] sm:$0xff]  ;;  %v1589_v18 = vld [vmem:[#allocation3 + $0xa8] sm:$0xff]  ;;  %2118 = vmatprep.subr.bf16.mxu1 %v2117_v48  ;;  %p2345_p11 = por %p2344_p10, %p2343_p9 }
0x2bdc   :  { %2148 = vmatpush3.bf16.msra.mxu0 %v2147_v6  ;;  %v2149_v15 = vpack.c.bf16 %v1619_v12, %v1618_v11  ;;  %v1603_v16 = vld [vmem:[#allocation3 + $0x118] sm:$0xff]  ;;  %v2121_v19 = vpack.c.bf16 %v1589_v18, %v1588_v17  ;;  %v1572_v7 = vld [vmem:[#allocation3 + $0x20] sm:$0xff]  ;;  %v1573_v24 = vld [vmem:[#allocation3 + $0x28] sm:$0xff] }
0x2bdd   :  { %v2151_v47 = vpack.c.bf16 %v1603_v16, %v1602_v13  ;;  %v1620_v63 = vld [vmem:[#allocation3 + $0x1a0] sm:$0xff]  ;;  %v1621_v21 = vld [vmem:[#allocation3 + $0x1a8] sm:$0xff]  ;;  %v2123_v35 = vpack.c.bf16 %v1573_v24, %v1572_v7  ;;  %v1590_v26 = vld [vmem:[#allocation3 + $0xb0] sm:$0xff]  ;;  %p2346_p12 = pnand %p2345_p11, %p2339_p8 }
0x2bde   :  { %2150 = vmatprep.subr.bf16.mxu0 %v2149_v15  ;;  %v1604_v29 = vld [vmem:[#allocation3 + $0x120] sm:$0xff]  ;;  %v1605_v23 = vld [vmem:[#allocation3 + $0x128] sm:$0xff]  ;;  %2120 = vmatpush3.bf16.msra.mxu1 %v2119_v52  ;;  %v2153_v25 = vpack.c.bf16 %v1621_v21, %v1620_v63  ;;  %v1591_v28 = vld [vmem:[#allocation3 + $0xb8] sm:$0xff] }
0x2bdf   :  { %v1574_v27 = vld [vmem:[#allocation3 + $0x30] sm:$0xff]  ;;  %2122 = vmatprep.subr.bf16.mxu1 %v2121_v19  ;;  %v2155_v31 = vpack.c.bf16 %v1605_v23, %v1604_v29  ;;  %v2125_v32 = vpack.c.bf16 %v1591_v28, %v1590_v26  ;;  %v1575_v33 = vld [vmem:[#allocation3 + $0x38] sm:$0xff]  ;;  %v1592_v58 = vld [vmem:[#allocation3 + $0xc0] sm:$0xff] }
0x2be0   :  { %2152 = vmatpush3.bf16.msra.mxu0 %v2151_v47  ;;  %v1622_v36 = vld [vmem:[#allocation3 + $0x1b0] sm:$0xff]  ;;  %v1623_v37 = vld [vmem:[#allocation3 + $0x1b8] sm:$0xff]  ;;  %v1593_v10 = vld [vmem:[#allocation3 + $0xc8] sm:$0xff]  ;;  %v2127_v41 = vpack.c.bf16 %v1575_v33, %v1574_v27 }
0x2be1   :  { %2154 = vmatprep.subr.bf16.mxu0 %v2153_v25  ;;  %v2157_v34 = vpack.c.bf16 %v1623_v37, %v1622_v36  ;;  %v1606_v38 = vld [vmem:[#allocation3 + $0x130] sm:$0xff]  ;;  %v1607_v40 = vld [vmem:[#allocation3 + $0x138] sm:$0xff]  ;;  %v1624_v42 = vld [vmem:[#allocation3 + $0x1c0] sm:$0xff]  ;;  %v2129_v44 = vpack.c.bf16 %v1593_v10, %v1592_v58 }
0x2be2   :  { %2124 = vmatpush3.bf16.msra.mxu1 %v2123_v35  ;;  %v1625_v43 = vld [vmem:[#allocation3 + $0x1c8] sm:$0xff]  ;;  %v2159_v22 = vpack.c.bf16 %v1607_v40, %v1606_v38  ;;  %v1576_v45 = vld [vmem:[#allocation3 + $0x40] sm:$0xff]  ;;  %v1594_v53 = vld [vmem:[#allocation3 + $0xd0] sm:$0xff] }
0x2be3   :  { %2126 = vmatprep.subr.bf16.mxu1 %v2125_v32  ;;  %v1577_v46 = vld [vmem:[#allocation3 + $0x48] sm:$0xff]  ;;  %v1608_v49 = vld [vmem:[#allocation3 + $0x140] sm:$0xff]  ;;  %v2161_v50 = vpack.c.bf16 %v1625_v43, %v1624_v42  ;;  %v1595_v54 = vld [vmem:[#allocation3 + $0xd8] sm:$0xff] }
0x2be4   :  { %2156 = vmatpush3.bf16.msra.mxu0 %v2155_v31  ;;  %v1609_v51 = vld [vmem:[#allocation3 + $0x148] sm:$0xff]  ;;  %v1626_v55 = vld [vmem:[#allocation3 + $0x1d0] sm:$0xff]  ;;  %v1627_v56 = vld [vmem:[#allocation3 + $0x1d8] sm:$0xff]  ;;  %v2131_v57 = vpack.c.bf16 %v1577_v46, %v1576_v45  ;;  %v2133_v59 = vpack.c.bf16 %v1595_v54, %v1594_v53 }
0x2be5   :  { %2158 = vmatprep.subr.bf16.mxu0 %v2157_v34  ;;  %v2163_v39 = vpack.c.bf16 %v1609_v51, %v1608_v49  ;;  %v1578_v60 = vld [vmem:[#allocation3 + $0x50] sm:$0xff]  ;;  %v1579_v61 = vld [vmem:[#allocation3 + $0x58] sm:$0xff]  ;;  %v2165_v0 = vpack.c.bf16 %v1627_v56, %v1626_v55  ;;  %v1596_v30 = vld [vmem:[#allocation3 + $0xe0] sm:$0xff] }
0x2be6   :  { %2128 = vmatpush3.bf16.msra.mxu1 %v2127_v41  ;;  %v1610_v62 = vld [vmem:[#allocation3 + $0x150] sm:$0xff]  ;;  %v1611_v1 = vld [vmem:[#allocation3 + $0x158] sm:$0xff]  ;;  %v1597_v2 = vld [vmem:[#allocation3 + $0xe8] sm:$0xff]  ;;  %v2135_v14 = vpack.c.bf16 %v1579_v61, %v1578_v60 }
0x2be7   :  { %2130 = vmatprep.subr.bf16.mxu1 %v2129_v44  ;;  %v1628_v3 = vld [vmem:[#allocation3 + $0x1e0] sm:$0xff]  ;;  %v1629_v5 = vld [vmem:[#allocation3 + $0x1e8] sm:$0xff]  ;;  %v2167_v20 = vpack.c.bf16 %v1611_v1, %v1610_v62  ;;  %v2137_v8 = vpack.c.bf16 %v1597_v2, %v1596_v30  ;;  %v1567_v52 = vld [vmem:[#allocation2] sm:$0xff] }
0x2be8   :  { %2160 = vmatpush3.bf16.msra.mxu0 %v2159_v22  ;;  %v1580_v6 = vld [vmem:[#allocation3 + $0x60] sm:$0xff]  ;;  %v1581_v9 = vld [vmem:[#allocation3 + $0x68] sm:$0xff]  ;;  %v2169_v11 = vpack.c.bf16 %v1629_v5, %v1628_v3  ;;  %v1598_v13 = vld [vmem:[#allocation3 + $0xf0] sm:$0xff]  ;;  %v1647_v16 = vrot.slane %v1567_v52, %v2702_v4  ;;  %v1640_v17 = vcombine.high %v1567_v52, %v1567_v52 }
0x2be9   :  { %2162 = vmatprep.subr.bf16.mxu0 %v2161_v50  ;;  %v1612_v48 = vld [vmem:[#allocation3 + $0x160] sm:$0xff]  ;;  %v1613_v12 = vld [vmem:[#allocation3 + $0x168] sm:$0xff]  ;;  %v1599_v15 = vld [vmem:[#allocation3 + $0xf8] sm:$0xff]  ;;  %v2139_v19 = vpack.c.bf16 %v1581_v9, %v1580_v6 }
0x2bea   :  { %2132 = vmatpush3.bf16.msra.mxu1 %v2131_v57  ;;  %v1630_v18 = vld [vmem:[#allocation3 + $0x1f0] sm:$0xff]  ;;  %v1631_v47 = vld [vmem:[#allocation3 + $0x1f8] sm:$0xff]  ;;  %v1655_v7 = vcombine.high %v1647_v16, %v1647_v16  ;;  %v1654_v24 = vrot.slane %v1640_v17, %v2702_v4  ;;  %v2171_v63 = vpack.c.bf16 %v1613_v12, %v1612_v48  ;;  %v2141_v21 = vpack.c.bf16 %v1599_v15, %v1598_v13 }
0x2beb   :  { %2134 = vmatprep.subr.bf16.mxu1 %v2133_v59  ;;  %v1582_v29 = vld [vmem:[#allocation3 + $0x70] sm:$0xff]  ;;  %v1583_v23 = vld [vmem:[#allocation3 + $0x78] sm:$0xff]  ;;  %v2173_v35 = vpack.c.bf16 %v1631_v47, %v1630_v18 }
0x2bec   :  { %2164 = vmatpush3.bf16.msra.mxu0 %v2163_v39  ;;  %v1614_v25 = vld [vmem:[#allocation3 + $0x170] sm:$0xff]  ;;  %v1615_v26 = vld [vmem:[#allocation3 + $0x178] sm:$0xff]  ;;  %1725 = vmatprep.mubr.f32.mxu1 %v1655_v7  ;;  %v1656_v28 = vcombine.high %v1654_v24, %v1654_v24  ;;  %v2143_v27 = vpack.c.bf16 %v1583_v23, %v1582_v29 }
0x2bed   :  { %2166 = vmatprep.subr.bf16.mxu0 %v2165_v0  ;;  %v2175_v31 = vpack.c.bf16 %v1615_v26, %v1614_v25  ;;  %v1856_v32 = vld [vmem:[%s2811_s4] ss:$0 sm:$0xff] }
0x2bee   :  { %2136 = vmatpush3.bf16.msra.mxu1 %v2135_v14  ;;  %1795 = vmatprep.mubr.f32.mxu0 %v1656_v28 }
0x2bef   :  { %2138 = vmatprep.subr.bf16.mxu1 %v2137_v8 }
0x2bf0   :  { %2168 = vmatpush3.bf16.msra.mxu0 %v2167_v20 }
0x2bf1   :  { %2170 = vmatprep.subr.bf16.mxu0 %v2169_v11 }
0x2bf2   :  { %2140 = vmatpush3.bf16.msra.mxu1 %v2139_v19 }
0x2bf3   :  { %2142 = vmatprep.subr.bf16.mxu1 %v2141_v21 }
0x2bf4   :  { %2172 = vmatpush3.bf16.msra.mxu0 %v2171_v63 }
0x2bf5   :  { %2174 = vmatprep.subr.bf16.mxu0 %v2173_v35 }
0x2bf6   :  { %2144 = vmatpush3.bf16.msra.mxu1 %v2143_v27 }
0x2bf8   :  { %2176 = vmatpush3.bf16.msra.mxu0 %v2175_v31 }
0x2bf9   :  { %1726 = vmatmul.mubr.f32.vlgmr.msra.gmra.mrb[32].mxu1 %v1647_v16 }
0x2bfb   :  { %1796 = vmatmul.mubr.f32.vlgmr.msra.gmra.mrb[36].mxu0 %v1654_v24 }
0x2ccc   :  { %v1941_v4 = vpop.f32.mrb[32].mxu1 }
0x2ccd   :  { %v1942_v33 = vpop.f32.mrb[33].mxu1 }
0x2cce   :  { %v1976_v36 = vpop.f32.mrb[36].mxu0  ;;  %v1943_v37 = vadd.f32 %v1942_v33, %v1941_v4 }
0x2ccf   :  { %v1977_v34 = vpop.f32.mrb[37].mxu0 }
0x2cd0   :  { %v1978_v38 = vadd.f32 %v1977_v34, %v1976_v36  ;;  %v1728_v40 = vadd.f32 %v1943_v37, %v1856_v32 }
0x2cd2   :  { %v1798_v58 = vadd.f32 %v1978_v38, %v1728_v40 }
0x2cd4   :  { %1801 = vst [vmem:[#allocation5] sm:$0x3] %v1798_v58 }
0x2cd5   :  { %2349 = shalt.err (!%p2346_p12)
}
0x2cd6   :  { %s2350_s11 = scalar_lea.hbm %s2813_s6, 32 }
0x2cd7   :  { %p2351_p13 = scmp.ne.s32.totalorder %s2813_s6, %s2350_s11  ;;  %p2354_p0 = scmp.lt.u32.totalorder %s2350_s11, %s2813_s6 }
0x2cd9   :  { %p2356_p1 = pnand %p2354_p0, %p2351_p13 }
0x2cdb   :  { %2359 = shalt.err (!%p2356_p1)
}
0x2cdc   :  { %1811 = dma.vmem_to_hbm [thread:$0]  %s1809_s8, 32, %s2813_s6, [#allocation6]  }
0x2cdd   :  { %2362 = dma.done.wait [#allocation6], 32  }
0x2cde   :  { %2363 = vsyncadd [#allocation6], 4294967264 }
0x2cdf   :  { %1815 = vsyncpa [#allocation6], 1 }
0x2ce0   :  { %1816 = vsyncmov [#allocation4] }
0x2ce3   :  { %s1817_s15 = vpop.sfrf %1816 }
0x2ce4   :  { %p1857_p2 = scmp.ne.s32.totalorder %s1817_s15, 0 }
0x2ce6   :  { %1821 = shalt.err (%p1857_p2)  }

</bundles_post_ra>
